<compile_context>
chip_gen: v5e
topology: v5e:2x2
jax: 0.10.0
libtpu: 0.0.40
codegen_flags: <defaults>
</compile_context>

<pallas_src>
import functools

import jax
import jax.numpy as jnp
import numpy as np
from jax import lax
from jax.experimental import pallas as pl
from jax.experimental.pallas import tpu as pltpu

ADJACENCY = [
    (0, 0, 2, 1), (0, 1, 3, 0), (0, 2, 4, 2), (0, 3, 5, 2),
    (1, 0, 3, 1), (1, 1, 2, 0), (1, 2, 4, 0), (1, 3, 5, 0),
    (2, 0, 1, 1), (2, 1, 0, 0), (2, 2, 4, 3), (2, 3, 5, 3),
    (3, 0, 0, 1), (3, 1, 1, 0), (3, 2, 4, 1), (3, 3, 5, 1),
    (4, 0, 1, 2), (4, 1, 3, 2), (4, 2, 0, 2), (4, 3, 2, 2),
    (5, 0, 1, 3), (5, 1, 3, 3), (5, 2, 0, 3), (5, 3, 2, 3),
]


def _matched_adjacency(H, W, S):
    """Static shape-match filter (mirrors the torch `continue` branch).

    Returns per-face dicts: col_edges[f][edge in {0,1}] = (adj_face, adj_edge),
    row_edges[f][edge in {2,3}] = (adj_face, adj_edge)."""
    col_edges = {f: {} for f in range(6)}
    row_edges = {f: {} for f in range(6)}
    for (f, e, af, ae) in ADJACENCY:
        e_shape = (H, S) if e < 2 else (S, W)
        a_shape = (H, S) if ae < 2 else (S, W)
        if e_shape != a_shape:
            continue  # torch prints "Dimension mismatch ..." and skips
        # With H > S and W > S a match implies same orientation, so the torch
        # flip branch is never taken on this path.
        if e < 2:
            col_edges[f][e] = (af, ae)
        else:
            row_edges[f][e] = (af, ae)
    return col_edges, row_edges


def _largest_divisor_leq(n, cap):
    cap = max(1, min(n, cap))
    for d in range(cap, 0, -1):
        if n % d == 0:
            return d
    return 1


def _make_kernel(F, H, W, S, col_edges, row_edges):
    """Per-block kernel. Block shape: (bt, F, tc, H, W)."""

    def kernel(x_ref, o_ref):
        # ---- hoisted blend weights (computed once per grid step) ----
        # >=2-D iota (Mosaic-friendly); broadcast inside the multiplies below
        # is a cheap sublane/lane broadcast.
        inv = jnp.float32(1.0 / (S - 1))
        w_up_l = lax.broadcasted_iota(jnp.int32, (1, 1, 1, S), 3).astype(
            jnp.float32) * inv                       # linspace(0,1,S) along W
        w_dn_l = jnp.float32(1.0) - w_up_l
        w_up_s = lax.broadcasted_iota(jnp.int32, (1, 1, S, 1), 2).astype(
            jnp.float32) * inv                       # linspace(0,1,S) along H
        w_dn_s = jnp.float32(1.0) - w_up_s

        def adj_strip(af, ae):
            # Narrow Ref slice: only the S-wide strip is loaded from VMEM.
            # Matched entries are same-orientation => no flip needed here.
            if ae == 0:
                a = x_ref[:, af, :, :, 0:S]
            elif ae == 1:
                a = x_ref[:, af, :, :, W - S:W]
            elif ae == 2:
                a = x_ref[:, af, :, 0:S, :]
            else:
                a = x_ref[:, af, :, H - S:H, :]
            return a.astype(jnp.float32)

        for f in range(F):                     # unrolled at trace time
            xf = x_ref[:, f, :, :, :].astype(jnp.float32)   # one face only
            ce = col_edges.get(f, {})
            re_ = row_edges.get(f, {})

            # ---- column edges (left/right), read from ORIGINAL x ----
            y = xf
            if ce:
                left = xf[..., :, 0:S]
                right = xf[..., :, W - S:W]
                if 0 in ce:   # edge 0: weights linspace(0,1,S) along W
                    left = left * w_up_l + adj_strip(*ce[0]) * w_dn_l
                if 1 in ce:   # edge 1: weights linspace(1,0,S) along W
                    right = right * w_dn_l + adj_strip(*ce[1]) * w_up_l
                mid = [xf[..., :, S:W - S]] if W > 2 * S else []
                y = jnp.concatenate([left] + mid + [right], axis=-1)

            # ---- row edges (top/bottom); written AFTER the column edges in
            #      torch, so they own the corners -> compose them last ----
            z = y
            if re_:
                top = xf[..., 0:S, :]
                bot = xf[..., H - S:H, :]
                if 2 in re_:  # edge 2: weights linspace(0,1,S) along H
                    top = top * w_up_s + adj_strip(*re_[2]) * w_dn_s
                if 3 in re_:  # edge 3: weights linspace(1,0,S) along H
                    bot = bot * w_dn_s + adj_strip(*re_[3]) * w_up_s
                mid = [y[..., S:H - S, :]] if H > 2 * S else []
                z = jnp.concatenate([top] + mid + [bot], axis=-2)

            # Single lane-dense store per face (no narrow masked edge stores).
            o_ref[:, f, :, :, :] = z.astype(o_ref.dtype)

    return kernel


@functools.partial(jax.jit, static_argnames=("overlap_size",))
def overlapping_edge_processor(x, overlap_size=4):
    """x: (B, 6, C, H, W)  ->  same shape/dtype."""
    B, F, C, H, W = x.shape
    S = int(overlap_size)
    if F != 6:
        raise ValueError("expected 6 cubemap faces")
    if S < 2:
        raise ValueError("overlap_size must be >= 2 (linspace needs S-1 > 0)")
    if H < 2 * S or W < 2 * S:
        raise ValueError("faces must be at least 2*overlap_size per side")

    col_edges, row_edges = _matched_adjacency(H, W, S)

    # ---- block sizing: ~2-4 MiB blocks when possible, never above the VMEM
    #      budget (in + out, double-buffered, fits v7x's 64 MiB / 32 MiB scoped)
    itemsize = np.dtype(x.dtype).itemsize
    budget = 4 * 1024 * 1024                       # bytes per block buffer
    elem_bytes = F * C * H * W * itemsize          # one batch element
    if elem_bytes <= budget:
        tc = C
        bt = _largest_divisor_leq(B, budget // elem_bytes)   # fold batches
    else:
        bt = 1
        tc = _largest_divisor_leq(C, max(1, budget // (F * H * W * itemsize)))
    # TODO(synk): faces with 6*H*W*itemsize >> 4 MiB would additionally need a
    # spatial grid axis; not required for the geometries exercised here.

    kernel = _make_kernel(F, H, W, S, col_edges, row_edges)
    block = pl.BlockSpec((bt, F, tc, H, W), lambda b, c: (b, 0, c, 0, 0))

    return pl.pallas_call(
        kernel,
        out_shape=jax.ShapeDtypeStruct(x.shape, x.dtype),
        grid_spec=pltpu.PrefetchScalarGridSpec(
            num_scalar_prefetch=0,
            grid=(B // bt, C // tc),
            in_specs=[block],
            out_specs=block,
        ),
        compiler_params=pltpu.CompilerParams(
            dimension_semantics=("parallel", "parallel"),
            vmem_limit_bytes=32 * 1024 * 1024,
        ),
    )(x)


def _reference_numpy(x_np, S):
    """Direct numpy transcription of the torch forward (for verification)."""
    out = x_np.copy()
    for (f, e, af, ae) in ADJACENCY:
        face = x_np[:, f]
        adj = x_np[:, af]
        if e == 0:
            er = face[:, :, :, :S]
            w = np.linspace(0, 1, S, dtype=np.float32).reshape(1, 1, 1, S)
        elif e == 1:
            er = face[:, :, :, -S:]
            w = np.linspace(1, 0, S, dtype=np.float32).reshape(1, 1, 1, S)
        elif e == 2:
            er = face[:, :, :S, :]
            w = np.linspace(0, 1, S, dtype=np.float32).reshape(1, 1, S, 1)
        else:
            er = face[:, :, -S:, :]
            w = np.linspace(1, 0, S, dtype=np.float32).reshape(1, 1, S, 1)
        if ae == 0:
            ar = adj[:, :, :, :S]
            if e in (2, 3):
                ar = ar[..., ::-1]
        elif ae == 1:
            ar = adj[:, :, :, -S:]
            if e in (2, 3):
                ar = ar[..., ::-1]
        elif ae == 2:
            ar = adj[:, :, :S, :]
            if e in (0, 1):
                ar = ar[..., ::-1, :]
        else:
            ar = adj[:, :, -S:, :]
            if e in (0, 1):
                ar = ar[..., ::-1, :]
        if er.shape != ar.shape:
            continue  # torch prints a mismatch message and skips
        blended = er * w + ar * (1.0 - w)
        if e == 0:
            out[:, f, :, :, :S] = blended
        elif e == 1:
            out[:, f, :, :, -S:] = blended
        elif e == 2:
            out[:, f, :, :S, :] = blended
        else:
            out[:, f, :, -S:, :] = blended
    return out


if __name__ == "__main__":
    B, F, C, H, W = 2, 6, 4, 16, 16
    overlap = 4

    key = jax.random.PRNGKey(0)
    x = jax.random.normal(key, (B, F, C, H, W), dtype=jnp.float32)

    out = overlapping_edge_processor(x, overlap_size=overlap)
    out = jax.block_until_ready(out)

    ref = _reference_numpy(np.asarray(x), overlap)
    np.testing.assert_allclose(np.asarray(out), ref, rtol=1e-5, atol=1e-5)

    print("KERNEL_OK")
</pallas_src>

<mosaic_0001>
module attributes {stable_mosaic.version = 11 : i64} {
  func.func @kernel(%arg0: i32, %arg1: i32, %arg2: memref<2x6x4x16x16xf32, #tpu.memory_space<vmem>>, %arg3: memref<2x6x4x16x16xf32, #tpu.memory_space<vmem>>) attributes {dimension_semantics = [#tpu.dimension_semantics<parallel>, #tpu.dimension_semantics<parallel>], iteration_bounds = array<i64: 1, 1>, scalar_prefetch = 0 : i64, scratch_operands = 0 : i64, tpu.core_type = #tpu.core_type<tc>, window_params = [{transform_indices = @transform_0, window_bounds = array<i64: 2, 6, 4, 16, 16>}, {transform_indices = @transform_1, window_bounds = array<i64: 2, 6, 4, 16, 16>}]} {
    %0 = tpu.iota {dimensions = array<i32: 3>} : vector<1x1x1x4xi32>
    %1 = arith.sitofp %0 : vector<1x1x1x4xi32> to vector<1x1x1x4xf32>
    %cst = arith.constant 0.333333343 : f32
    %2 = vector.broadcast %cst : f32 to vector<1x1x1x4xf32>
    %3 = arith.mulf %1, %2 : vector<1x1x1x4xf32>
    %cst_0 = arith.constant 1.000000e+00 : f32
    %4 = vector.broadcast %cst_0 : f32 to vector<1x1x1x4xf32>
    %5 = arith.subf %4, %3 : vector<1x1x1x4xf32>
    %6 = tpu.iota {dimensions = array<i32: 2>} : vector<1x1x4x1xi32>
    %7 = arith.sitofp %6 : vector<1x1x4x1xi32> to vector<1x1x4x1xf32>
    %cst_1 = arith.constant 0.333333343 : f32
    %8 = vector.broadcast %cst_1 : f32 to vector<1x1x4x1xf32>
    %9 = arith.mulf %7, %8 : vector<1x1x4x1xf32>
    %cst_2 = arith.constant 1.000000e+00 : f32
    %10 = vector.broadcast %cst_2 : f32 to vector<1x1x4x1xf32>
    %11 = arith.subf %10, %9 : vector<1x1x4x1xf32>
    %c0 = arith.constant 0 : index
    %c0_3 = arith.constant 0 : index
    %c0_4 = arith.constant 0 : index
    %c0_5 = arith.constant 0 : index
    %c0_6 = arith.constant 0 : index
    %12 = vector.load %arg2[%c0, %c0_3, %c0_4, %c0_5, %c0_6] : memref<2x6x4x16x16xf32, #tpu.memory_space<vmem>>, vector<2x1x4x16x16xf32>
    %13 = vector.shape_cast %12 : vector<2x1x4x16x16xf32> to vector<2x4x16x16xf32>
    %14 = vector.extract_strided_slice %13 {offsets = [0, 0, 0, 0], sizes = [2, 4, 16, 4], strides = [1, 1, 1, 1]} : vector<2x4x16x16xf32> to vector<2x4x16x4xf32>
    %15 = vector.extract_strided_slice %13 {offsets = [0, 0, 0, 12], sizes = [2, 4, 16, 4], strides = [1, 1, 1, 1]} : vector<2x4x16x16xf32> to vector<2x4x16x4xf32>
    %16 = vector.broadcast %3 : vector<1x1x1x4xf32> to vector<2x4x16x4xf32>
    %17 = arith.mulf %14, %16 : vector<2x4x16x4xf32>
    %c0_7 = arith.constant 0 : index
    %c2 = arith.constant 2 : index
    %c0_8 = arith.constant 0 : index
    %c0_9 = arith.constant 0 : index
    %c12 = arith.constant 12 : index
    %18 = vector.load %arg2[%c0_7, %c2, %c0_8, %c0_9, %c12] : memref<2x6x4x16x16xf32, #tpu.memory_space<vmem>>, vector<2x1x4x16x4xf32>
    %19 = vector.shape_cast %18 : vector<2x1x4x16x4xf32> to vector<2x4x16x4xf32>
    %20 = vector.broadcast %5 : vector<1x1x1x4xf32> to vector<2x4x16x4xf32>
    %21 = arith.mulf %19, %20 : vector<2x4x16x4xf32>
    %22 = arith.addf %17, %21 : vector<2x4x16x4xf32>
    %23 = vector.broadcast %5 : vector<1x1x1x4xf32> to vector<2x4x16x4xf32>
    %24 = arith.mulf %15, %23 : vector<2x4x16x4xf32>
    %c0_10 = arith.constant 0 : index
    %c3 = arith.constant 3 : index
    %c0_11 = arith.constant 0 : index
    %c0_12 = arith.constant 0 : index
    %c0_13 = arith.constant 0 : index
    %25 = vector.load %arg2[%c0_10, %c3, %c0_11, %c0_12, %c0_13] : memref<2x6x4x16x16xf32, #tpu.memory_space<vmem>>, vector<2x1x4x16x4xf32>
    %26 = vector.shape_cast %25 : vector<2x1x4x16x4xf32> to vector<2x4x16x4xf32>
    %27 = vector.broadcast %3 : vector<1x1x1x4xf32> to vector<2x4x16x4xf32>
    %28 = arith.mulf %26, %27 : vector<2x4x16x4xf32>
    %29 = arith.addf %24, %28 : vector<2x4x16x4xf32>
    %30 = vector.extract_strided_slice %13 {offsets = [0, 0, 0, 4], sizes = [2, 4, 16, 8], strides = [1, 1, 1, 1]} : vector<2x4x16x16xf32> to vector<2x4x16x8xf32>
    %31 = tpu.concatenate %22, %30, %29 in 3 : vector<2x4x16x4xf32>, vector<2x4x16x8xf32>, vector<2x4x16x4xf32> -> vector<2x4x16x16xf32>
    %32 = vector.extract_strided_slice %13 {offsets = [0, 0, 0, 0], sizes = [2, 4, 4, 16], strides = [1, 1, 1, 1]} : vector<2x4x16x16xf32> to vector<2x4x4x16xf32>
    %33 = vector.extract_strided_slice %13 {offsets = [0, 0, 12, 0], sizes = [2, 4, 4, 16], strides = [1, 1, 1, 1]} : vector<2x4x16x16xf32> to vector<2x4x4x16xf32>
    %34 = vector.broadcast %9 : vector<1x1x4x1xf32> to vector<2x4x4x16xf32>
    %35 = arith.mulf %32, %34 : vector<2x4x4x16xf32>
    %c0_14 = arith.constant 0 : index
    %c4 = arith.constant 4 : index
    %c0_15 = arith.constant 0 : index
    %c0_16 = arith.constant 0 : index
    %c0_17 = arith.constant 0 : index
    %36 = vector.load %arg2[%c0_14, %c4, %c0_15, %c0_16, %c0_17] : memref<2x6x4x16x16xf32, #tpu.memory_space<vmem>>, vector<2x1x4x4x16xf32>
    %37 = vector.shape_cast %36 : vector<2x1x4x4x16xf32> to vector<2x4x4x16xf32>
    %38 = vector.broadcast %11 : vector<1x1x4x1xf32> to vector<2x4x4x16xf32>
    %39 = arith.mulf %37, %38 : vector<2x4x4x16xf32>
    %40 = arith.addf %35, %39 : vector<2x4x4x16xf32>
    %41 = vector.broadcast %11 : vector<1x1x4x1xf32> to vector<2x4x4x16xf32>
    %42 = arith.mulf %33, %41 : vector<2x4x4x16xf32>
    %c0_18 = arith.constant 0 : index
    %c5 = arith.constant 5 : index
    %c0_19 = arith.constant 0 : index
    %c0_20 = arith.constant 0 : index
    %c0_21 = arith.constant 0 : index
    %43 = vector.load %arg2[%c0_18, %c5, %c0_19, %c0_20, %c0_21] : memref<2x6x4x16x16xf32, #tpu.memory_space<vmem>>, vector<2x1x4x4x16xf32>
    %44 = vector.shape_cast %43 : vector<2x1x4x4x16xf32> to vector<2x4x4x16xf32>
    %45 = vector.broadcast %9 : vector<1x1x4x1xf32> to vector<2x4x4x16xf32>
    %46 = arith.mulf %44, %45 : vector<2x4x4x16xf32>
    %47 = arith.addf %42, %46 : vector<2x4x4x16xf32>
    %48 = vector.extract_strided_slice %31 {offsets = [0, 0, 4, 0], sizes = [2, 4, 8, 16], strides = [1, 1, 1, 1]} : vector<2x4x16x16xf32> to vector<2x4x8x16xf32>
    %49 = tpu.concatenate %40, %48, %47 in 2 : vector<2x4x4x16xf32>, vector<2x4x8x16xf32>, vector<2x4x4x16xf32> -> vector<2x4x16x16xf32>
    %c0_22 = arith.constant 0 : index
    %c0_23 = arith.constant 0 : index
    %c0_24 = arith.constant 0 : index
    %c0_25 = arith.constant 0 : index
    %c0_26 = arith.constant 0 : index
    %50 = vector.load %arg3[%c0_22, %c0_23, %c0_24, %c0_25, %c0_26] : memref<2x6x4x16x16xf32, #tpu.memory_space<vmem>>, vector<2x1x4x16x16xf32>
    %51 = vector.shape_cast %50 : vector<2x1x4x16x16xf32> to vector<2x4x16x16xf32>
    %52 = vector.shape_cast %49 : vector<2x4x16x16xf32> to vector<2x1x4x16x16xf32>
    tpu.vector_store %arg3[%c0_22, %c0_23, %c0_24, %c0_25, %c0_26], %52 {strides = array<i32>} : memref<2x6x4x16x16xf32, #tpu.memory_space<vmem>>, vector<2x1x4x16x16xf32>,
    %c0_27 = arith.constant 0 : index
    %c1 = arith.constant 1 : index
    %c0_28 = arith.constant 0 : index
    %c0_29 = arith.constant 0 : index
    %c0_30 = arith.constant 0 : index
    %53 = vector.load %arg2[%c0_27, %c1, %c0_28, %c0_29, %c0_30] : memref<2x6x4x16x16xf32, #tpu.memory_space<vmem>>, vector<2x1x4x16x16xf32>
    %54 = vector.shape_cast %53 : vector<2x1x4x16x16xf32> to vector<2x4x16x16xf32>
    %55 = vector.extract_strided_slice %54 {offsets = [0, 0, 0, 0], sizes = [2, 4, 16, 4], strides = [1, 1, 1, 1]} : vector<2x4x16x16xf32> to vector<2x4x16x4xf32>
    %56 = vector.extract_strided_slice %54 {offsets = [0, 0, 0, 12], sizes = [2, 4, 16, 4], strides = [1, 1, 1, 1]} : vector<2x4x16x16xf32> to vector<2x4x16x4xf32>
    %57 = vector.broadcast %3 : vector<1x1x1x4xf32> to vector<2x4x16x4xf32>
    %58 = arith.mulf %55, %57 : vector<2x4x16x4xf32>
    %c0_31 = arith.constant 0 : index
    %c3_32 = arith.constant 3 : index
    %c0_33 = arith.constant 0 : index
    %c0_34 = arith.constant 0 : index
    %c12_35 = arith.constant 12 : index
    %59 = vector.load %arg2[%c0_31, %c3_32, %c0_33, %c0_34, %c12_35] : memref<2x6x4x16x16xf32, #tpu.memory_space<vmem>>, vector<2x1x4x16x4xf32>
    %60 = vector.shape_cast %59 : vector<2x1x4x16x4xf32> to vector<2x4x16x4xf32>
    %61 = vector.broadcast %5 : vector<1x1x1x4xf32> to vector<2x4x16x4xf32>
    %62 = arith.mulf %60, %61 : vector<2x4x16x4xf32>
    %63 = arith.addf %58, %62 : vector<2x4x16x4xf32>
    %64 = vector.broadcast %5 : vector<1x1x1x4xf32> to vector<2x4x16x4xf32>
    %65 = arith.mulf %56, %64 : vector<2x4x16x4xf32>
    %c0_36 = arith.constant 0 : index
    %c2_37 = arith.constant 2 : index
    %c0_38 = arith.constant 0 : index
    %c0_39 = arith.constant 0 : index
    %c0_40 = arith.constant 0 : index
    %66 = vector.load %arg2[%c0_36, %c2_37, %c0_38, %c0_39, %c0_40] : memref<2x6x4x16x16xf32, #tpu.memory_space<vmem>>, vector<2x1x4x16x4xf32>
    %67 = vector.shape_cast %66 : vector<2x1x4x16x4xf32> to vector<2x4x16x4xf32>
    %68 = vector.broadcast %3 : vector<1x1x1x4xf32> to vector<2x4x16x4xf32>
    %69 = arith.mulf %67, %68 : vector<2x4x16x4xf32>
    %70 = arith.addf %65, %69 : vector<2x4x16x4xf32>
    %71 = vector.extract_strided_slice %54 {offsets = [0, 0, 0, 4], sizes = [2, 4, 16, 8], strides = [1, 1, 1, 1]} : vector<2x4x16x16xf32> to vector<2x4x16x8xf32>
    %72 = tpu.concatenate %63, %71, %70 in 3 : vector<2x4x16x4xf32>, vector<2x4x16x8xf32>, vector<2x4x16x4xf32> -> vector<2x4x16x16xf32>
    %c0_41 = arith.constant 0 : index
    %c1_42 = arith.constant 1 : index
    %c0_43 = arith.constant 0 : index
    %c0_44 = arith.constant 0 : index
    %c0_45 = arith.constant 0 : index
    %73 = vector.load %arg3[%c0_41, %c1_42, %c0_43, %c0_44, %c0_45] : memref<2x6x4x16x16xf32, #tpu.memory_space<vmem>>, vector<2x1x4x16x16xf32>
    %74 = vector.shape_cast %73 : vector<2x1x4x16x16xf32> to vector<2x4x16x16xf32>
    %75 = vector.shape_cast %72 : vector<2x4x16x16xf32> to vector<2x1x4x16x16xf32>
    tpu.vector_store %arg3[%c0_41, %c1_42, %c0_43, %c0_44, %c0_45], %75 {strides = array<i32>} : memref<2x6x4x16x16xf32, #tpu.memory_space<vmem>>, vector<2x1x4x16x16xf32>,
    %c0_46 = arith.constant 0 : index
    %c2_47 = arith.constant 2 : index
    %c0_48 = arith.constant 0 : index
    %c0_49 = arith.constant 0 : index
    %c0_50 = arith.constant 0 : index
    %76 = vector.load %arg2[%c0_46, %c2_47, %c0_48, %c0_49, %c0_50] : memref<2x6x4x16x16xf32, #tpu.memory_space<vmem>>, vector<2x1x4x16x16xf32>
    %77 = vector.shape_cast %76 : vector<2x1x4x16x16xf32> to vector<2x4x16x16xf32>
    %78 = vector.extract_strided_slice %77 {offsets = [0, 0, 0, 0], sizes = [2, 4, 16, 4], strides = [1, 1, 1, 1]} : vector<2x4x16x16xf32> to vector<2x4x16x4xf32>
    %79 = vector.extract_strided_slice %77 {offsets = [0, 0, 0, 12], sizes = [2, 4, 16, 4], strides = [1, 1, 1, 1]} : vector<2x4x16x16xf32> to vector<2x4x16x4xf32>
    %80 = vector.broadcast %3 : vector<1x1x1x4xf32> to vector<2x4x16x4xf32>
    %81 = arith.mulf %78, %80 : vector<2x4x16x4xf32>
    %c0_51 = arith.constant 0 : index
    %c1_52 = arith.constant 1 : index
    %c0_53 = arith.constant 0 : index
    %c0_54 = arith.constant 0 : index
    %c12_55 = arith.constant 12 : index
    %82 = vector.load %arg2[%c0_51, %c1_52, %c0_53, %c0_54, %c12_55] : memref<2x6x4x16x16xf32, #tpu.memory_space<vmem>>, vector<2x1x4x16x4xf32>
    %83 = vector.shape_cast %82 : vector<2x1x4x16x4xf32> to vector<2x4x16x4xf32>
    %84 = vector.broadcast %5 : vector<1x1x1x4xf32> to vector<2x4x16x4xf32>
    %85 = arith.mulf %83, %84 : vector<2x4x16x4xf32>
    %86 = arith.addf %81, %85 : vector<2x4x16x4xf32>
    %87 = vector.broadcast %5 : vector<1x1x1x4xf32> to vector<2x4x16x4xf32>
    %88 = arith.mulf %79, %87 : vector<2x4x16x4xf32>
    %c0_56 = arith.constant 0 : index
    %c0_57 = arith.constant 0 : index
    %c0_58 = arith.constant 0 : index
    %c0_59 = arith.constant 0 : index
    %c0_60 = arith.constant 0 : index
    %89 = vector.load %arg2[%c0_56, %c0_57, %c0_58, %c0_59, %c0_60] : memref<2x6x4x16x16xf32, #tpu.memory_space<vmem>>, vector<2x1x4x16x4xf32>
    %90 = vector.shape_cast %89 : vector<2x1x4x16x4xf32> to vector<2x4x16x4xf32>
    %91 = vector.broadcast %3 : vector<1x1x1x4xf32> to vector<2x4x16x4xf32>
    %92 = arith.mulf %90, %91 : vector<2x4x16x4xf32>
    %93 = arith.addf %88, %92 : vector<2x4x16x4xf32>
    %94 = vector.extract_strided_slice %77 {offsets = [0, 0, 0, 4], sizes = [2, 4, 16, 8], strides = [1, 1, 1, 1]} : vector<2x4x16x16xf32> to vector<2x4x16x8xf32>
    %95 = tpu.concatenate %86, %94, %93 in 3 : vector<2x4x16x4xf32>, vector<2x4x16x8xf32>, vector<2x4x16x4xf32> -> vector<2x4x16x16xf32>
    %96 = vector.extract_strided_slice %77 {offsets = [0, 0, 0, 0], sizes = [2, 4, 4, 16], strides = [1, 1, 1, 1]} : vector<2x4x16x16xf32> to vector<2x4x4x16xf32>
    %97 = vector.extract_strided_slice %77 {offsets = [0, 0, 12, 0], sizes = [2, 4, 4, 16], strides = [1, 1, 1, 1]} : vector<2x4x16x16xf32> to vector<2x4x4x16xf32>
    %98 = vector.broadcast %9 : vector<1x1x4x1xf32> to vector<2x4x4x16xf32>
    %99 = arith.mulf %96, %98 : vector<2x4x4x16xf32>
    %c0_61 = arith.constant 0 : index
    %c4_62 = arith.constant 4 : index
    %c0_63 = arith.constant 0 : index
    %c12_64 = arith.constant 12 : index
    %c0_65 = arith.constant 0 : index
    %100 = vector.load %arg2[%c0_61, %c4_62, %c0_63, %c12_64, %c0_65] : memref<2x6x4x16x16xf32, #tpu.memory_space<vmem>>, vector<2x1x4x4x16xf32>
    %101 = vector.shape_cast %100 : vector<2x1x4x4x16xf32> to vector<2x4x4x16xf32>
    %102 = vector.broadcast %11 : vector<1x1x4x1xf32> to vector<2x4x4x16xf32>
    %103 = arith.mulf %101, %102 : vector<2x4x4x16xf32>
    %104 = arith.addf %99, %103 : vector<2x4x4x16xf32>
    %105 = vector.broadcast %11 : vector<1x1x4x1xf32> to vector<2x4x4x16xf32>
    %106 = arith.mulf %97, %105 : vector<2x4x4x16xf32>
    %c0_66 = arith.constant 0 : index
    %c5_67 = arith.constant 5 : index
    %c0_68 = arith.constant 0 : index
    %c12_69 = arith.constant 12 : index
    %c0_70 = arith.constant 0 : index
    %107 = vector.load %arg2[%c0_66, %c5_67, %c0_68, %c12_69, %c0_70] : memref<2x6x4x16x16xf32, #tpu.memory_space<vmem>>, vector<2x1x4x4x16xf32>
    %108 = vector.shape_cast %107 : vector<2x1x4x4x16xf32> to vector<2x4x4x16xf32>
    %109 = vector.broadcast %9 : vector<1x1x4x1xf32> to vector<2x4x4x16xf32>
    %110 = arith.mulf %108, %109 : vector<2x4x4x16xf32>
    %111 = arith.addf %106, %110 : vector<2x4x4x16xf32>
    %112 = vector.extract_strided_slice %95 {offsets = [0, 0, 4, 0], sizes = [2, 4, 8, 16], strides = [1, 1, 1, 1]} : vector<2x4x16x16xf32> to vector<2x4x8x16xf32>
    %113 = tpu.concatenate %104, %112, %111 in 2 : vector<2x4x4x16xf32>, vector<2x4x8x16xf32>, vector<2x4x4x16xf32> -> vector<2x4x16x16xf32>
    %c0_71 = arith.constant 0 : index
    %c2_72 = arith.constant 2 : index
    %c0_73 = arith.constant 0 : index
    %c0_74 = arith.constant 0 : index
    %c0_75 = arith.constant 0 : index
    %114 = vector.load %arg3[%c0_71, %c2_72, %c0_73, %c0_74, %c0_75] : memref<2x6x4x16x16xf32, #tpu.memory_space<vmem>>, vector<2x1x4x16x16xf32>
    %115 = vector.shape_cast %114 : vector<2x1x4x16x16xf32> to vector<2x4x16x16xf32>
    %116 = vector.shape_cast %113 : vector<2x4x16x16xf32> to vector<2x1x4x16x16xf32>
    tpu.vector_store %arg3[%c0_71, %c2_72, %c0_73, %c0_74, %c0_75], %116 {strides = array<i32>} : memref<2x6x4x16x16xf32, #tpu.memory_space<vmem>>, vector<2x1x4x16x16xf32>,
    %c0_76 = arith.constant 0 : index
    %c3_77 = arith.constant 3 : index
    %c0_78 = arith.constant 0 : index
    %c0_79 = arith.constant 0 : index
    %c0_80 = arith.constant 0 : index
    %117 = vector.load %arg2[%c0_76, %c3_77, %c0_78, %c0_79, %c0_80] : memref<2x6x4x16x16xf32, #tpu.memory_space<vmem>>, vector<2x1x4x16x16xf32>
    %118 = vector.shape_cast %117 : vector<2x1x4x16x16xf32> to vector<2x4x16x16xf32>
    %119 = vector.extract_strided_slice %118 {offsets = [0, 0, 0, 0], sizes = [2, 4, 16, 4], strides = [1, 1, 1, 1]} : vector<2x4x16x16xf32> to vector<2x4x16x4xf32>
    %120 = vector.extract_strided_slice %118 {offsets = [0, 0, 0, 12], sizes = [2, 4, 16, 4], strides = [1, 1, 1, 1]} : vector<2x4x16x16xf32> to vector<2x4x16x4xf32>
    %121 = vector.broadcast %3 : vector<1x1x1x4xf32> to vector<2x4x16x4xf32>
    %122 = arith.mulf %119, %121 : vector<2x4x16x4xf32>
    %c0_81 = arith.constant 0 : index
    %c0_82 = arith.constant 0 : index
    %c0_83 = arith.constant 0 : index
    %c0_84 = arith.constant 0 : index
    %c12_85 = arith.constant 12 : index
    %123 = vector.load %arg2[%c0_81, %c0_82, %c0_83, %c0_84, %c12_85] : memref<2x6x4x16x16xf32, #tpu.memory_space<vmem>>, vector<2x1x4x16x4xf32>
    %124 = vector.shape_cast %123 : vector<2x1x4x16x4xf32> to vector<2x4x16x4xf32>
    %125 = vector.broadcast %5 : vector<1x1x1x4xf32> to vector<2x4x16x4xf32>
    %126 = arith.mulf %124, %125 : vector<2x4x16x4xf32>
    %127 = arith.addf %122, %126 : vector<2x4x16x4xf32>
    %128 = vector.broadcast %5 : vector<1x1x1x4xf32> to vector<2x4x16x4xf32>
    %129 = arith.mulf %120, %128 : vector<2x4x16x4xf32>
    %c0_86 = arith.constant 0 : index
    %c1_87 = arith.constant 1 : index
    %c0_88 = arith.constant 0 : index
    %c0_89 = arith.constant 0 : index
    %c0_90 = arith.constant 0 : index
    %130 = vector.load %arg2[%c0_86, %c1_87, %c0_88, %c0_89, %c0_90] : memref<2x6x4x16x16xf32, #tpu.memory_space<vmem>>, vector<2x1x4x16x4xf32>
    %131 = vector.shape_cast %130 : vector<2x1x4x16x4xf32> to vector<2x4x16x4xf32>
    %132 = vector.broadcast %3 : vector<1x1x1x4xf32> to vector<2x4x16x4xf32>
    %133 = arith.mulf %131, %132 : vector<2x4x16x4xf32>
    %134 = arith.addf %129, %133 : vector<2x4x16x4xf32>
    %135 = vector.extract_strided_slice %118 {offsets = [0, 0, 0, 4], sizes = [2, 4, 16, 8], strides = [1, 1, 1, 1]} : vector<2x4x16x16xf32> to vector<2x4x16x8xf32>
    %136 = tpu.concatenate %127, %135, %134 in 3 : vector<2x4x16x4xf32>, vector<2x4x16x8xf32>, vector<2x4x16x4xf32> -> vector<2x4x16x16xf32>
    %c0_91 = arith.constant 0 : index
    %c3_92 = arith.constant 3 : index
    %c0_93 = arith.constant 0 : index
    %c0_94 = arith.constant 0 : index
    %c0_95 = arith.constant 0 : index
    %137 = vector.load %arg3[%c0_91, %c3_92, %c0_93, %c0_94, %c0_95] : memref<2x6x4x16x16xf32, #tpu.memory_space<vmem>>, vector<2x1x4x16x16xf32>
    %138 = vector.shape_cast %137 : vector<2x1x4x16x16xf32> to vector<2x4x16x16xf32>
    %139 = vector.shape_cast %136 : vector<2x4x16x16xf32> to vector<2x1x4x16x16xf32>
    tpu.vector_store %arg3[%c0_91, %c3_92, %c0_93, %c0_94, %c0_95], %139 {strides = array<i32>} : memref<2x6x4x16x16xf32, #tpu.memory_space<vmem>>, vector<2x1x4x16x16xf32>,
    %c0_96 = arith.constant 0 : index
    %c4_97 = arith.constant 4 : index
    %c0_98 = arith.constant 0 : index
    %c0_99 = arith.constant 0 : index
    %c0_100 = arith.constant 0 : index
    %140 = vector.load %arg2[%c0_96, %c4_97, %c0_98, %c0_99, %c0_100] : memref<2x6x4x16x16xf32, #tpu.memory_space<vmem>>, vector<2x1x4x16x16xf32>
    %141 = vector.shape_cast %140 : vector<2x1x4x16x16xf32> to vector<2x4x16x16xf32>
    %142 = vector.extract_strided_slice %141 {offsets = [0, 0, 0, 0], sizes = [2, 4, 4, 16], strides = [1, 1, 1, 1]} : vector<2x4x16x16xf32> to vector<2x4x4x16xf32>
    %143 = vector.extract_strided_slice %141 {offsets = [0, 0, 12, 0], sizes = [2, 4, 4, 16], strides = [1, 1, 1, 1]} : vector<2x4x16x16xf32> to vector<2x4x4x16xf32>
    %144 = vector.broadcast %9 : vector<1x1x4x1xf32> to vector<2x4x4x16xf32>
    %145 = arith.mulf %142, %144 : vector<2x4x4x16xf32>
    %c0_101 = arith.constant 0 : index
    %c0_102 = arith.constant 0 : index
    %c0_103 = arith.constant 0 : index
    %c0_104 = arith.constant 0 : index
    %c0_105 = arith.constant 0 : index
    %146 = vector.load %arg2[%c0_101, %c0_102, %c0_103, %c0_104, %c0_105] : memref<2x6x4x16x16xf32, #tpu.memory_space<vmem>>, vector<2x1x4x4x16xf32>
    %147 = vector.shape_cast %146 : vector<2x1x4x4x16xf32> to vector<2x4x4x16xf32>
    %148 = vector.broadcast %11 : vector<1x1x4x1xf32> to vector<2x4x4x16xf32>
    %149 = arith.mulf %147, %148 : vector<2x4x4x16xf32>
    %150 = arith.addf %145, %149 : vector<2x4x4x16xf32>
    %151 = vector.broadcast %11 : vector<1x1x4x1xf32> to vector<2x4x4x16xf32>
    %152 = arith.mulf %143, %151 : vector<2x4x4x16xf32>
    %c0_106 = arith.constant 0 : index
    %c2_107 = arith.constant 2 : index
    %c0_108 = arith.constant 0 : index
    %c0_109 = arith.constant 0 : index
    %c0_110 = arith.constant 0 : index
    %153 = vector.load %arg2[%c0_106, %c2_107, %c0_108, %c0_109, %c0_110] : memref<2x6x4x16x16xf32, #tpu.memory_space<vmem>>, vector<2x1x4x4x16xf32>
    %154 = vector.shape_cast %153 : vector<2x1x4x4x16xf32> to vector<2x4x4x16xf32>
    %155 = vector.broadcast %9 : vector<1x1x4x1xf32> to vector<2x4x4x16xf32>
    %156 = arith.mulf %154, %155 : vector<2x4x4x16xf32>
    %157 = arith.addf %152, %156 : vector<2x4x4x16xf32>
    %158 = vector.extract_strided_slice %141 {offsets = [0, 0, 4, 0], sizes = [2, 4, 8, 16], strides = [1, 1, 1, 1]} : vector<2x4x16x16xf32> to vector<2x4x8x16xf32>
    %159 = tpu.concatenate %150, %158, %157 in 2 : vector<2x4x4x16xf32>, vector<2x4x8x16xf32>, vector<2x4x4x16xf32> -> vector<2x4x16x16xf32>
    %c0_111 = arith.constant 0 : index
    %c4_112 = arith.constant 4 : index
    %c0_113 = arith.constant 0 : index
    %c0_114 = arith.constant 0 : index
    %c0_115 = arith.constant 0 : index
    %160 = vector.load %arg3[%c0_111, %c4_112, %c0_113, %c0_114, %c0_115] : memref<2x6x4x16x16xf32, #tpu.memory_space<vmem>>, vector<2x1x4x16x16xf32>
    %161 = vector.shape_cast %160 : vector<2x1x4x16x16xf32> to vector<2x4x16x16xf32>
    %162 = vector.shape_cast %159 : vector<2x4x16x16xf32> to vector<2x1x4x16x16xf32>
    tpu.vector_store %arg3[%c0_111, %c4_112, %c0_113, %c0_114, %c0_115], %162 {strides = array<i32>} : memref<2x6x4x16x16xf32, #tpu.memory_space<vmem>>, vector<2x1x4x16x16xf32>,
    %c0_116 = arith.constant 0 : index
    %c5_117 = arith.constant 5 : index
    %c0_118 = arith.constant 0 : index
    %c0_119 = arith.constant 0 : index
    %c0_120 = arith.constant 0 : index
    %163 = vector.load %arg2[%c0_116, %c5_117, %c0_118, %c0_119, %c0_120] : memref<2x6x4x16x16xf32, #tpu.memory_space<vmem>>, vector<2x1x4x16x16xf32>
    %164 = vector.shape_cast %163 : vector<2x1x4x16x16xf32> to vector<2x4x16x16xf32>
    %165 = vector.extract_strided_slice %164 {offsets = [0, 0, 0, 0], sizes = [2, 4, 4, 16], strides = [1, 1, 1, 1]} : vector<2x4x16x16xf32> to vector<2x4x4x16xf32>
    %166 = vector.extract_strided_slice %164 {offsets = [0, 0, 12, 0], sizes = [2, 4, 4, 16], strides = [1, 1, 1, 1]} : vector<2x4x16x16xf32> to vector<2x4x4x16xf32>
    %167 = vector.broadcast %9 : vector<1x1x4x1xf32> to vector<2x4x4x16xf32>
    %168 = arith.mulf %165, %167 : vector<2x4x4x16xf32>
    %c0_121 = arith.constant 0 : index
    %c0_122 = arith.constant 0 : index
    %c0_123 = arith.constant 0 : index
    %c12_124 = arith.constant 12 : index
    %c0_125 = arith.constant 0 : index
    %169 = vector.load %arg2[%c0_121, %c0_122, %c0_123, %c12_124, %c0_125] : memref<2x6x4x16x16xf32, #tpu.memory_space<vmem>>, vector<2x1x4x4x16xf32>
    %170 = vector.shape_cast %169 : vector<2x1x4x4x16xf32> to vector<2x4x4x16xf32>
    %171 = vector.broadcast %11 : vector<1x1x4x1xf32> to vector<2x4x4x16xf32>
    %172 = arith.mulf %170, %171 : vector<2x4x4x16xf32>
    %173 = arith.addf %168, %172 : vector<2x4x4x16xf32>
    %174 = vector.broadcast %11 : vector<1x1x4x1xf32> to vector<2x4x4x16xf32>
    %175 = arith.mulf %166, %174 : vector<2x4x4x16xf32>
    %c0_126 = arith.constant 0 : index
    %c2_127 = arith.constant 2 : index
    %c0_128 = arith.constant 0 : index
    %c12_129 = arith.constant 12 : index
    %c0_130 = arith.constant 0 : index
    %176 = vector.load %arg2[%c0_126, %c2_127, %c0_128, %c12_129, %c0_130] : memref<2x6x4x16x16xf32, #tpu.memory_space<vmem>>, vector<2x1x4x4x16xf32>
    %177 = vector.shape_cast %176 : vector<2x1x4x4x16xf32> to vector<2x4x4x16xf32>
    %178 = vector.broadcast %9 : vector<1x1x4x1xf32> to vector<2x4x4x16xf32>
    %179 = arith.mulf %177, %178 : vector<2x4x4x16xf32>
    %180 = arith.addf %175, %179 : vector<2x4x4x16xf32>
    %181 = vector.extract_strided_slice %164 {offsets = [0, 0, 4, 0], sizes = [2, 4, 8, 16], strides = [1, 1, 1, 1]} : vector<2x4x16x16xf32> to vector<2x4x8x16xf32>
    %182 = tpu.concatenate %173, %181, %180 in 2 : vector<2x4x4x16xf32>, vector<2x4x8x16xf32>, vector<2x4x4x16xf32> -> vector<2x4x16x16xf32>
    %c0_131 = arith.constant 0 : index
    %c5_132 = arith.constant 5 : index
    %c0_133 = arith.constant 0 : index
    %c0_134 = arith.constant 0 : index
    %c0_135 = arith.constant 0 : index
    %183 = vector.load %arg3[%c0_131, %c5_132, %c0_133, %c0_134, %c0_135] : memref<2x6x4x16x16xf32, #tpu.memory_space<vmem>>, vector<2x1x4x16x16xf32>
    %184 = vector.shape_cast %183 : vector<2x1x4x16x16xf32> to vector<2x4x16x16xf32>
    %185 = vector.shape_cast %182 : vector<2x4x16x16xf32> to vector<2x1x4x16x16xf32>
    tpu.vector_store %arg3[%c0_131, %c5_132, %c0_133, %c0_134, %c0_135], %185 {strides = array<i32>} : memref<2x6x4x16x16xf32, #tpu.memory_space<vmem>>, vector<2x1x4x16x16xf32>,
    return
  }
  func.func @transform_0(%arg0: i32, %arg1: i32) -> (i32, i32, i32, i32, i32) {
    %c0_i32 = arith.constant 0 : i32
    %c0_i32_0 = arith.constant 0 : i32
    %c0_i32_1 = arith.constant 0 : i32
    %c0_i32_2 = arith.constant 0 : i32
    return %arg0, %c0_i32, %arg1, %c0_i32_0, %c0_i32_1 : i32, i32, i32, i32, i32
  }
  func.func @transform_1(%arg0: i32, %arg1: i32) -> (i32, i32, i32, i32, i32) {
    %c0_i32 = arith.constant 0 : i32
    %c0_i32_0 = arith.constant 0 : i32
    %c0_i32_1 = arith.constant 0 : i32
    %c0_i32_2 = arith.constant 0 : i32
    return %arg0, %c0_i32, %arg1, %c0_i32_0, %c0_i32_1 : i32, i32, i32, i32, i32
  }
}

</mosaic_0001>

<bundles_post_ra>
// kernel: overlapping_edge_processor.1
= control target key start
LH: loop header
LB: loop body
LE: loop exit
PB: predicated region body
PF: predicated region fallthrough
CT: control target
= control target key end

     0   :  { %6 = vsyncpa [#allocation3], 0  ;;  %s3474_s0 = inlined_call_operand.hbm [shape: f32[2,6,4,16,16], index: 0, kind: input, shape index: {}]   ;;  %s3475_s1 = inlined_call_operand.hbm [shape: f32[2,6,4,16,16], index: 1, kind: output, shape index: {}]  }
   0x1   :  { %7 = vsyncpa [#allocation4], 0  ;;  %s12_s8 = sshll.u32 %s3474_s0, 4  ;;  %s1894_s9 = smov [#allocation2]   ;;  %s13_s8 = int_to_ptr.hbm [resolvable:$true] %s12_s8 }
   0x2   :  { %s14_s10 = sshll.u32 %s1894_s9, 4  ;;  %s1895_s11 = smov 128   ;;  %s15_s10 = int_to_ptr.vmem [resolvable:$true] %s14_s10 }
   0x3   :  { %s1896_s12 = smov 8  }
   0x4   :  { %20 = dma.hbm_to_vmem [thread:$0]  %s13_s8, 12288, %s15_s10, [#allocation3], %s1895_s11, %s1895_s11, %s1896_s12  }
   0x5   :  { %1890 = dma.done.wait [#allocation3], 12288  }
   0x6   :  { %1891 = vsyncadd [#allocation3], 4294955008  ;;  %v25_v0 = vlaneseq  ;;  %v1919_v4 = vld [vmem:[#allocation2 + $0xd0] sm:$0xff]  ;;  %v1921_v5 = vld [vmem:[#allocation2 + $0xc0] sm:$0xff]  ;;  %s1897_s0 = smov 12   ;;  %s1898_s13 = smov 116  }
   0x7   :  { %v1931_v9 = vld [vmem:[#allocation2 + $0xe8] sm:$0xff]  ;;  %v1935_v11 = vld [vmem:[#allocation2 + $0xd8] sm:$0xff]  ;;  %v1946_v15 = vld [vmem:[#allocation2 + $0x240] sm:$0xff]  ;;  %vm313_vm0 = vcmask 31744   ;;  %vm330_vm1 = vcmask 97280   ;;  %vm440_vm2 = vcmask 1043456  }
   0x8   :  { %v26_v1 = vand.u32 127, %v25_v0  ;;  %v1933_v10 = vld [vmem:[#allocation2 + $0xc8] sm:$0xff]  ;;  %v1948_v16 = vld [vmem:[#allocation2 + $0xe0] sm:$0xff]  ;;  %v1950_v17 = vld [vmem:[#allocation2 + $0xf0] sm:$0xff]  ;;  %vm457_vm3 = vcmask 130048   ;;  %s1899_s14 = smov [#allocation5]  }
   0x9   :  { %v1961_v21 = vld [vmem:[#allocation2 + $0x258] sm:$0xff]  ;;  %v1965_v23 = vld [vmem:[#allocation2 + $0x248] sm:$0xff]  ;;  %v1976_v27 = vld [vmem:[#allocation2 + $0x270] sm:$0xff]  ;;  %s1820_s15 = sshll.u32 %s1899_s14, 4  ;;  %s1822_s18 = sshll.u32 %s3475_s1, 4  ;;  %s1821_s15 = int_to_ptr.vmem [resolvable:$true] %s1820_s15  ;;  %s1823_s18 = int_to_ptr.hbm [resolvable:$true] %s1822_s18 }
   0xa   :  { %v27_v2 = vcvt.s32.f32 %v26_v1  ;;  %v1963_v22 = vld [vmem:[#allocation2 + $0xf8] sm:$0xff]  ;;  %v1978_v28 = vld [vmem:[#allocation2 + $0x250] sm:$0xff]  ;;  %v1980_v29 = vld [vmem:[#allocation2 + $0x260] sm:$0xff] }
   0xb   :  { %v1991_v33 = vld [vmem:[#allocation2 + $0x268] sm:$0xff]  ;;  %v1993_v34 = vld [vmem:[#allocation2 + $0x278] sm:$0xff]  ;;  %v2009_v43 = vld [vmem:[#allocation2 + $0x80] sm:$0xff] }
   0xc   :  { %v1917_v3 = vmul.f32 0.33333334, %v27_v2  ;;  %v2003_v40 = vld [vmem:[#allocation2 + $0x188] sm:$0xff]  ;;  %v2005_v41 = vld [vmem:[#allocation2 + $0x98] sm:$0xff]  ;;  %v2026_v51 = vld [vmem:[#allocation2 + $0x1a0] sm:$0xff] }
   0xd   :  { %v2007_v42 = vld [vmem:[#allocation2 + $0x88] sm:$0xff]  ;;  %v2028_v52 = vld [vmem:[#allocation2 + $0xa0] sm:$0xff]  ;;  %v2030_v53 = vld [vmem:[#allocation2 + $0x90] sm:$0xff] }
   0xe   :  { %v29_v6 = vsub.f32 1.0, %v1917_v3  ;;  %v219_v7 = vmul.f32 %v1919_v4, %v1917_v3  ;;  %v217_v8 = vmul.f32 %v1921_v5, %v1917_v3  ;;  %v222_v12 = vmul.f32 %v1931_v9, %v1917_v3  ;;  %v2032_v54 = vld [vmem:[#allocation2 + $0xa8] sm:$0xff]  ;;  %v2047_v61 = vld [vmem:[#allocation2] sm:$0xff]  ;;  %v2049_v62 = vld [vmem:[#allocation2 + $0xb8] sm:$0xff] }
   0xf   :  { %v218_v13 = vmul.f32 %v1933_v10, %v1917_v3  ;;  %v220_v14 = vmul.f32 %v1935_v11, %v1917_v3  ;;  %v225_v18 = vmul.f32 %v1946_v15, %v1917_v3  ;;  %v221_v19 = vmul.f32 %v1948_v16, %v1917_v3  ;;  %v2051_v63 = vld [vmem:[#allocation2 + $0xb0] sm:$0xff]  ;;  %v2053_v1 = vld [vmem:[#allocation2 + $0x200] sm:$0xff] }
  0x10   :  { %85 = vrot.lane.b32.xlu0 %v29_v6, %s1897_s0  ;;  %253 = vrot.lane.b32.xlu1 %v219_v7, %s1897_s0  ;;  %v223_v20 = vmul.f32 %v1950_v17, %v1917_v3  ;;  %v228_v24 = vmul.f32 %v1961_v21, %v1917_v3  ;;  %v224_v25 = vmul.f32 %v1963_v22, %v1917_v3  ;;  %v2055_v2 = vld [vmem:[#allocation2 + $0x30] sm:$0xff] }
  0x11   :  { %249 = vrot.lane.b32.xlu2 %v217_v8, %s1897_s0  ;;  %v226_v26 = vmul.f32 %v1965_v23, %v1917_v3  ;;  %v231_v30 = vmul.f32 %v1976_v27, %v1917_v3  ;;  %v227_v31 = vmul.f32 %v1978_v28, %v1917_v3  ;;  %v229_v32 = vmul.f32 %v1980_v29, %v1917_v3 }
  0x12   :  { %v230_v35 = vmul.f32 %v1991_v33, %v1917_v3  ;;  %v232_v36 = vmul.f32 %v1993_v34, %v1917_v3 }
  0x18   :  { %259 = vrot.lane.b32.xlu1 %v222_v12, %s1897_s0  ;;  %251 = vrot.lane.b32.xlu0 %v218_v13, %s1897_s0 }
  0x19   :  { %255 = vrot.lane.b32.xlu2 %v220_v14, %s1897_s0 }
  0x20   :  { %265 = vrot.lane.b32.xlu1 %v225_v18, %s1897_s0  ;;  %257 = vrot.lane.b32.xlu0 %v221_v19, %s1897_s0  ;;  %v2077_v19 = vld [vmem:[#allocation2 + $0x210] sm:$0xff] }
  0x21   :  { %261 = vrot.lane.b32.xlu2 %v223_v20, %s1897_s0  ;;  %v2079_v20 = vld [vmem:[#allocation2 + $0x208] sm:$0xff] }
  0x28   :  { %271 = vrot.lane.b32.xlu1 %v228_v24, %s1897_s0  ;;  %263 = vrot.lane.b32.xlu0 %v224_v25, %s1897_s0  ;;  %v2081_v24 = vld [vmem:[#allocation2 + $0x218] sm:$0xff] }
  0x29   :  { %267 = vrot.lane.b32.xlu2 %v226_v26, %s1897_s0 }
  0x30   :  { %277 = vrot.lane.b32.xlu1 %v231_v30, %s1897_s0  ;;  %269 = vrot.lane.b32.xlu0 %v227_v31, %s1897_s0  ;;  %v2092_v31 = vld [vmem:[#allocation2 + $0x228] sm:$0xff] }
  0x31   :  { %273 = vrot.lane.b32.xlu2 %v229_v32, %s1897_s0  ;;  %v2094_v32 = vld [vmem:[#allocation2 + $0x220] sm:$0xff] }
  0x38   :  { %275 = vrot.lane.b32.xlu0 %v230_v35, %s1897_s0  ;;  %v2096_v35 = vld [vmem:[#allocation2 + $0x230] sm:$0xff] }
  0x39   :  { %279 = vrot.lane.b32.xlu2 %v232_v36, %s1897_s0 }
  0x6b   :  { %v250_v37 = vpop.permute.xlu2 %249 }
  0x73   :  { %v2001_v38 = vpop.permute.xlu2 %255 }
  0x7b   :  { %v262_v39 = vpop.permute.xlu2 %261 }
  0x82   :  { %v2011_v44 = vpop.permute.xlu0 %85 }
  0x83   :  { %v268_v45 = vpop.permute.xlu2 %267  ;;  %v193_v46 = vmul.f32 %v2011_v44, %v2003_v40  ;;  %v91_v47 = vmul.f32 %v2011_v44, %v2005_v41  ;;  %v89_v48 = vmul.f32 %v2011_v44, %v2007_v42  ;;  %v88_v49 = vmul.f32 %v2011_v44, %v2009_v43 }
  0x84   :  { %v196_v55 = vmul.f32 %v2011_v44, %v2026_v51  ;;  %v92_v57 = vmul.f32 %v2011_v44, %v2028_v52  ;;  %v90_v58 = vmul.f32 %v2011_v44, %v2030_v53  ;;  %v93_v60 = vmul.f32 %v2011_v44, %v2032_v54 }
  0x85   :  { %v2021_v50 = vadd.f32 %v268_v45, %v193_v46  ;;  %126 = vrot.lane.b32.xlu2 %v91_v47, %s1898_s13  ;;  %122 = vrot.lane.b32.xlu1 %v89_v48, %s1898_s13  ;;  %v2059_v6 = vmul.f32 %v2011_v44, %v2047_v61  ;;  %v95_v7 = vmul.f32 %v2011_v44, %v2049_v62  ;;  %v2107_v45 = vld [vmem:[#allocation2 + $0x238] sm:$0xff] }
  0x86   :  { %120 = vrot.lane.b32.xlu0 %v88_v49, %s1898_s13  ;;  %v94_v8 = vmul.f32 %v2011_v44, %v2051_v63  ;;  %v96_v12 = vmul.f32 %v2011_v44, %v2053_v1  ;;  %v190_v14 = vmul.f32 %v2011_v44, %v2055_v2  ;;  %v98_v25 = vmul.f32 %v2011_v44, %v2077_v19 }
  0x87   :  { %v2068_v13 = vadd.f32 %v250_v37, %v2059_v6  ;;  %v97_v26 = vmul.f32 %v2011_v44, %v2079_v20  ;;  %v99_v30 = vmul.f32 %v2011_v44, %v2081_v24  ;;  %v101_v36 = vmul.f32 %v2011_v44, %v2092_v31 }
  0x88   :  { %v2075_v18 = vadd.f32 %v262_v39, %v190_v14  ;;  %v100_v37 = vmul.f32 %v2011_v44, %v2094_v32  ;;  %v102_v39 = vmul.f32 %v2011_v44, %v2096_v35  ;;  %v525_v46 = vmul.f32 %v1919_v4, %v2011_v44 }
  0x89   :  { %v103_v47 = vmul.f32 %v2011_v44, %v2107_v45  ;;  %v523_v48 = vmul.f32 %v1921_v5, %v2011_v44  ;;  %v528_v49 = vmul.f32 %v1931_v9, %v2011_v44  ;;  %v526_v4 = vmul.f32 %v1935_v11, %v2011_v44 }
  0x8a   :  { %v531_v5 = vmul.f32 %v1946_v15, %v2011_v44  ;;  %v529_v9 = vmul.f32 %v1950_v17, %v2011_v44  ;;  %v530_v11 = vmul.f32 %v1963_v22, %v2011_v44  ;;  %v532_v15 = vmul.f32 %v1965_v23, %v2011_v44 }
  0x8b   :  { %v274_v56 = vpop.permute.xlu2 %273  ;;  %v31_v17 = vshrl.u32 %v25_v0, 7  ;;  %v533_v22 = vmul.f32 %v1978_v28, %v2011_v44  ;;  %v535_v23 = vmul.f32 %v1980_v29, %v2011_v44  ;;  %v536_v28 = vmul.f32 %v1991_v33, %v2011_v44 }
  0x8c   :  { %v2040_v59 = vadd.f32 %v274_v56, %v196_v55  ;;  %v524_v55 = vmul.f32 %v1933_v10, %v2011_v44  ;;  %v527_v56 = vmul.f32 %v1948_v16, %v2011_v44  ;;  %v534_v10 = vmul.f32 %v1961_v21, %v2011_v44  ;;  %v2145_v16 = vpop.permute.xlu1 %253 }
  0x8d   :  { %128 = vrot.lane.b32.xlu2 %v92_v57, %s1898_s13  ;;  %124 = vrot.lane.b32.xlu1 %v90_v58, %s1898_s13  ;;  %v2148_v57 = vpop.permute.xlu0 %251  ;;  %v537_v21 = vmul.f32 %v1976_v27, %v2011_v44  ;;  %v32_v58 = vcvt.s32.f32 %v31_v17  ;;  %v652_v27 = vmul.f32 %v2007_v42, %v1917_v3  ;;  %v538_v29 = vmul.f32 %v1993_v34, %v2011_v44 }
  0x8e   :  { %130 = vrot.lane.b32.xlu0 %v93_v60, %s1898_s13  ;;  %v651_v34 = vmul.f32 %v2009_v43, %v1917_v3 }
  0x8f   :  { %v2159_v60 = vmul.f32 0.33333334, %v32_v58 }
  0x91   :  { %3492 = vst [vmem:[#allocation8_spill] sm:$0xff] %v2159_v60 }
  0x93   :  { %v2175_v14 = vpop.permute.xlu2 %279 }
  0x94   :  { %v2161_v0 = vpop.permute.xlu1 %259 }
  0x95   :  { %134 = vrot.lane.b32.xlu2 %v95_v7, %s1898_s13  ;;  %132 = vrot.lane.b32.xlu1 %v94_v8, %s1898_s13  ;;  %v258_v7 = vpop.permute.xlu0 %257  ;;  %v2168_v8 = vsub.f32 1.0, %v2159_v60 }
  0x96   :  { %136 = vrot.lane.b32.xlu0 %v96_v12, %s1898_s13  ;;  %v393_v12 = vld [vmem:[#allocation2 + $0x150] sm:$0xf] }
  0x97   :  { %3493 = vst [vmem:[#allocation9_spill] sm:$0xff] %v2168_v8  ;;  %v2178_v42 = vrot.slane %v2168_v8, 4  ;;  %v401_v33 = vmul.f32 %v393_v12, %v2159_v60  ;;  %v661_v12 = vmul.f32 %v2077_v19, %v1917_v3  ;;  %v2247_v19 = vld [vmem:[#allocation2 + $0x10] sm:$0xff] }
  0x99   :  { %3494 = vst [vmem:[#allocation10_spill] sm:$0xff] %v2178_v42 }
  0x9d   :  { %140 = vrot.lane.b32.xlu2 %v98_v25, %s1898_s13  ;;  %138 = vrot.lane.b32.xlu1 %v97_v26, %s1898_s13  ;;  %v655_v25 = vmul.f32 %v2028_v52, %v1917_v3  ;;  %v653_v26 = vmul.f32 %v2030_v53, %v1917_v3 }
  0x9e   :  { %142 = vrot.lane.b32.xlu0 %v99_v30, %s1898_s13  ;;  %v38_v30 = vld [vmem:[#allocation2 + $0x18] sm:$0xff] }
  0x9f   :  { %v2198_v43 = vmul.f32 %v2011_v44, %v38_v30 }
  0xa5   :  { %146 = vrot.lane.b32.xlu2 %v101_v36, %s1898_s13  ;;  %144 = vrot.lane.b32.xlu1 %v100_v37, %s1898_s13  ;;  %v2187_v36 = vpop.permute.xlu1 %265  ;;  %v2189_v37 = vpop.permute.xlu0 %263 }
  0xa6   :  { %148 = vrot.lane.b32.xlu0 %v102_v39, %s1898_s13  ;;  %v417_v39 = vrot.slane %v401_v33, 4  ;;  %v657_v33 = vmul.f32 %v2051_v63, %v1917_v3  ;;  %v394_v63 = vld [vmem:[#allocation2 + $0x160] sm:$0xf] }
  0xad   :  { %559 = vrot.lane.b32.xlu2 %v525_v46, %s1898_s13  ;;  %150 = vrot.lane.b32.xlu1 %v103_v47, %s1898_s13  ;;  %v2192_v46 = vmul.f32 %v38_v30, %v1917_v3  ;;  %v384_v47 = vmul.f32 %v2178_v42, %v38_v30 }
  0xae   :  { %555 = vrot.lane.b32.xlu0 %v523_v48, %s1898_s13 }
  0xaf   :  { %v433_v48 = vadd.f32 %v417_v39, %v384_v47 }
  0xb5   :  { %565 = vrot.lane.b32.xlu2 %v528_v49, %s1898_s13  ;;  %557 = vrot.lane.b32.xlu1 %v524_v55, %s1898_s13  ;;  %v358_v49 = vld [vmem:[#allocation2 + $0x120] sm:$0xf]  ;;  %v300_v55 = vadd.f32 %v2001_v38, %v2198_v43 }
  0xb6   :  { %561 = vrot.lane.b32.xlu0 %v526_v4, %s1898_s13  ;;  %v658_v4 = vmul.f32 %v2049_v62, %v1917_v3 }
  0xbd   :  { %571 = vrot.lane.b32.xlu2 %v531_v5, %s1898_s13  ;;  %563 = vrot.lane.b32.xlu1 %v527_v56, %s1898_s13  ;;  %v654_v5 = vmul.f32 %v2005_v41, %v1917_v3  ;;  %v395_v41 = vld [vmem:[#allocation2 + $0x170] sm:$0xf] }
  0xbe   :  { %567 = vrot.lane.b32.xlu0 %v529_v9, %s1898_s13  ;;  %v656_v9 = vmul.f32 %v2032_v54, %v1917_v3  ;;  %v2223_v54 = vpop.permute.xlu0 %269 }
  0xc5   :  { %577 = vrot.lane.b32.xlu2 %v534_v10, %s1898_s13  ;;  %569 = vrot.lane.b32.xlu1 %v530_v11, %s1898_s13  ;;  %v39_v10 = vld [vmem:[#allocation2 + $0x20] sm:$0xff] }
  0xc6   :  { %573 = vrot.lane.b32.xlu0 %v532_v15, %s1898_s13  ;;  %v366_v15 = vmul.f32 %v358_v49, %v2168_v8  ;;  %v349_v17 = vmul.f32 %v39_v10, %v2159_v60  ;;  %v2216_v62 = vmul.f32 %v39_v10, %v1917_v3 }
  0xcd   :  { %583 = vrot.lane.b32.xlu2 %v537_v21, %s1898_s13  ;;  %575 = vrot.lane.b32.xlu1 %v533_v22, %s1898_s13  ;;  %v2218_v21 = vpop.permute.xlu1 %271  ;;  %v188_v22 = vmul.f32 %v2011_v44, %v39_v10 }
  0xce   :  { %579 = vrot.lane.b32.xlu0 %v535_v23, %s1898_s13  ;;  %v374_v23 = vadd.f32 %v366_v15, %v349_v17  ;;  %v2260_v15 = vmul.f32 %v394_v63, %v2159_v60 }
  0xd5   :  { %685 = vrot.lane.b32.xlu2 %v652_v27, %s1897_s0  ;;  %581 = vrot.lane.b32.xlu1 %v536_v28, %s1898_s13  ;;  %v403_v27 = vmul.f32 %v395_v41, %v2159_v60  ;;  %v2250_v49 = vpop.permute.xlu1 %277  ;;  %v664_v41 = vmul.f32 %v2092_v31, %v1917_v3 }
  0xd6   :  { %585 = vrot.lane.b32.xlu0 %v538_v29, %s1898_s13  ;;  %v301_v29 = vadd.f32 %v258_v7, %v188_v22  ;;  %v660_v22 = vmul.f32 %v2079_v20, %v1917_v3 }
  0xd7   :  { %v419_v47 = vrot.slane %v403_v27, 4  ;;  %v45_v27 = vld [vmem:[#allocation2 + $0x190] sm:$0xff] }
  0xd8   :  { %v352_v31 = vmul.f32 %v45_v27, %v2159_v60 }
  0xdd   :  { %691 = vrot.lane.b32.xlu2 %v655_v25, %s1897_s0  ;;  %683 = vrot.lane.b32.xlu1 %v651_v34, %s1897_s0  ;;  %v659_v34 = vmul.f32 %v2053_v1, %v1917_v3 }
  0xde   :  { %687 = vrot.lane.b32.xlu0 %v653_v26, %s1897_s0  ;;  %v392_v26 = vld [vmem:[#allocation2 + $0x140] sm:$0xf] }
  0xdf   :  { %v127_v52 = vpop.permute.xlu2 %126  ;;  %v400_v1 = vmul.f32 %v392_v26, %v2159_v60 }
  0xe0   :  { %v171_v53 = vadd.f32 %v127_v52, %v2192_v46 }
  0xe2   :  { %v317_v56 = vsel %vm313_vm0, %v171_v53, %v38_v30  ;;  %v42_v30 = vld [vmem:[#allocation2 + $0x38] sm:$0xff] }
  0xe3   :  { %v334_v11 = vsel %vm330_vm1, %v317_v56, %v300_v55  ;;  %v386_v52 = vmul.f32 %v2178_v42, %v42_v30  ;;  %v2240_v53 = vmul.f32 %v42_v30, %v1917_v3 }
  0xe4   :  { %v450_v38 = vsel %vm440_vm2, %v334_v11, %v433_v48  ;;  %v191_v48 = vmul.f32 %v2011_v44, %v42_v30 }
  0xe5   :  { %461 = vst.msk [vmem:[#allocation5 + $0x18] sm:$0xff] %vm457_vm3, %v450_v38  ;;  %697 = vrot.lane.b32.xlu2 %v658_v4, %s1897_s0  ;;  %689 = vrot.lane.b32.xlu1 %v654_v5, %s1897_s0  ;;  %v2254_v4 = vmul.f32 %v2247_v19, %v2159_v60  ;;  %v36_v5 = vld [vmem:[#allocation2 + $0x8] sm:$0xff]  ;;  %v435_v56 = vadd.f32 %v419_v47, %v386_v52  ;;  %v398_v38 = vld [vmem:[#allocation2 + $0x2e0] sm:$0xf] }
  0xe6   :  { %693 = vrot.lane.b32.xlu0 %v656_v9, %s1897_s0  ;;  %v361_v9 = vld [vmem:[#allocation2 + $0x290] sm:$0xf]  ;;  %v304_v17 = vadd.f32 %v2189_v37, %v191_v48  ;;  %v185_v37 = vmul.f32 %v2011_v44, %v36_v5  ;;  %v2276_v20 = vmul.f32 %v398_v38, %v2159_v60  ;;  %v2293_v52 = vmul.f32 %v2047_v61, %v1917_v3  ;;  %v48_v38 = vld [vmem:[#allocation2 + $0x1a8] sm:$0xff] }
  0xe7   :  { %v129_v58 = vpop.permute.xlu2 %128 }
  0xe8   :  { %v172_v28 = vadd.f32 %v129_v58, %v2216_v62  ;;  %v416_v58 = vrot.slane %v400_v1, 4  ;;  %v418_v1 = vrot.slane %v2260_v15, 4  ;;  %v422_v15 = vrot.slane %v2276_v20, 4 }
  0xea   :  { %v318_v25 = vsel %vm313_vm0, %v172_v28, %v39_v10  ;;  %v2256_v10 = vpop.permute.xlu0 %275 }
  0xeb   :  { %v335_v39 = vsel %vm330_vm1, %v318_v25, %v301_v29  ;;  %v662_v29 = vmul.f32 %v2081_v24, %v1917_v3  ;;  %v369_v25 = vmul.f32 %v361_v9, %v2168_v8  ;;  %v2283_v24 = vmul.f32 %v36_v5, %v1917_v3 }
  0xec   :  { %v443_v7 = vsel %vm440_vm2, %v374_v23, %v335_v39  ;;  %v383_v23 = vmul.f32 %v2178_v42, %v36_v5  ;;  %v2285_v39 = vld [vmem:[#allocation2 + $0x28] sm:$0xff]  ;;  %v298_v9 = vadd.f32 %v2148_v57, %v185_v37 }
  0xed   :  { %462 = vst.msk [vmem:[#allocation5 + $0x20] sm:$0xff] %vm457_vm3, %v443_v7  ;;  %703 = vrot.lane.b32.xlu2 %v661_v12, %s1897_s0  ;;  %695 = vrot.lane.b32.xlu1 %v657_v33, %s1897_s0  ;;  %v356_v12 = vld [vmem:[#allocation2 + $0x100] sm:$0xf]  ;;  %v357_v33 = vld [vmem:[#allocation2 + $0x110] sm:$0xf]  ;;  %v347_v7 = vmul.f32 %v2047_v61, %v2159_v60  ;;  %v385_v48 = vmul.f32 %v2178_v42, %v2285_v39 }
  0xee   :  { %699 = vrot.lane.b32.xlu0 %v659_v34, %s1897_s0  ;;  %v364_v47 = vmul.f32 %v356_v12, %v2168_v8  ;;  %v365_v63 = vmul.f32 %v357_v33, %v2168_v8  ;;  %v389_v12 = vmul.f32 %v2178_v42, %v48_v38 }
  0xef   :  { %v135_v55 = vpop.permute.xlu2 %134 }
  0xf0   :  { %v175_v11 = vadd.f32 %v135_v55, %v2240_v53  ;;  %v432_v55 = vadd.f32 %v416_v58, %v383_v23  ;;  %v372_v37 = vadd.f32 %v364_v47, %v347_v7 }
  0xf2   :  { %v321_v28 = vsel %vm313_vm0, %v175_v11, %v42_v30  ;;  %v2280_v30 = vmul.f32 %v45_v27, %v1917_v3  ;;  %v194_v11 = vmul.f32 %v2011_v44, %v45_v27 }
  0xf3   :  { %v338_v34 = vsel %vm330_vm1, %v321_v28, %v304_v17  ;;  %v377_v17 = vadd.f32 %v369_v25, %v352_v31  ;;  %v2306_v28 = vld [vmem:[#allocation2 + $0x40] sm:$0xff]  ;;  %v663_v25 = vmul.f32 %v2094_v32, %v1917_v3  ;;  %v2329_v32 = vmul.f32 %v48_v38, %v1917_v3 }
  0xf4   :  { %v452_v26 = vsel %vm440_vm2, %v338_v34, %v435_v56  ;;  %v186_v56 = vmul.f32 %v2011_v44, %v2247_v19  ;;  %v307_v33 = vadd.f32 %v2223_v54, %v194_v11  ;;  %v2320_v20 = vmul.f32 %v2306_v28, %v2011_v44 }
  0xf5   :  { %465 = vst.msk [vmem:[#allocation5 + $0x38] sm:$0xff] %vm457_vm3, %v452_v26  ;;  %709 = vrot.lane.b32.xlu2 %v664_v41, %s1897_s0  ;;  %701 = vrot.lane.b32.xlu1 %v660_v22, %s1897_s0  ;;  %v665_v26 = vmul.f32 %v2096_v35, %v1917_v3  ;;  %v2337_v35 = vmul.f32 %v2247_v19, %v1917_v3 }
  0xf6   :  { %705 = vrot.lane.b32.xlu0 %v662_v29, %s1897_s0 }
  0xf7   :  { %v141_v41 = vpop.permute.xlu2 %140  ;;  %v123_v22 = vpop.permute.xlu1 %122 }
  0xf8   :  { %v178_v58 = vadd.f32 %v141_v41, %v2280_v30  ;;  %v169_v23 = vadd.f32 %v123_v22, %v2283_v24  ;;  %v121_v29 = vpop.permute.xlu0 %120  ;;  %v396_v41 = vld [vmem:[#allocation2 + $0x2c0] sm:$0xf] }
  0xf9   :  { %v168_v57 = vadd.f32 %v121_v29, %v2293_v52  ;;  %v434_v29 = vadd.f32 %v418_v1, %v385_v48 }
  0xfa   :  { %v324_v31 = vsel %vm313_vm0, %v178_v58, %v45_v27  ;;  %v315_v34 = vsel %vm313_vm0, %v169_v23, %v36_v5  ;;  %v360_v27 = vld [vmem:[#allocation2 + $0x280] sm:$0xf]  ;;  %v2356_v58 = vld [vmem:[#allocation2 + $0x58] sm:$0xff]  ;;  %v299_v23 = vadd.f32 %v2145_v16, %v186_v56  ;;  %v359_v16 = vld [vmem:[#allocation2 + $0x130] sm:$0xf] }
  0xfb   :  { %v341_v54 = vsel %vm330_vm1, %v324_v31, %v307_v33  ;;  %v332_v11 = vsel %vm330_vm1, %v315_v34, %v298_v9  ;;  %v314_v47 = vsel %vm313_vm0, %v168_v57, %v2047_v61  ;;  %v2346_v61 = vmul.f32 %v2285_v39, %v1917_v3 }
  0xfc   :  { %v446_v5 = vsel %vm440_vm2, %v377_v17, %v341_v54  ;;  %v449_v7 = vsel %vm440_vm2, %v332_v11, %v432_v55  ;;  %v331_v22 = vsel %vm330_vm1, %v314_v47, %v2068_v13  ;;  %v373_v55 = vadd.f32 %v365_v63, %v2254_v4  ;;  %v397_v11 = vld [vmem:[#allocation2 + $0x2d0] sm:$0xf] }
  0xfd   :  { %468 = vst.msk [vmem:[#allocation5 + $0x190] sm:$0xff] %vm457_vm3, %v446_v5  ;;  %v441_v9 = vsel %vm440_vm2, %v372_v37, %v331_v22  ;;  %876 = vrot.lane.b32.xlu2 %v2320_v20, %s1898_s13  ;;  %707 = vrot.lane.b32.xlu1 %v663_v25, %s1897_s0  ;;  %v2350_v13 = vmul.f32 %v396_v41, %v2159_v60  ;;  %v2362_v37 = vld [vmem:[#allocation2 + $0x48] sm:$0xff]  ;;  %v43_v5 = vld [vmem:[#allocation2 + $0x180] sm:$0xff] }
  0xfe   :  { %v189_v17 = vmul.f32 %v2011_v44, %v2285_v39  ;;  %459 = vst.msk [vmem:[#allocation5 + $0x8] sm:$0xff] %vm457_vm3, %v449_v7  ;;  %711 = vrot.lane.b32.xlu0 %v665_v26, %s1897_s0  ;;  %v368_v33 = vmul.f32 %v360_v27, %v2168_v8  ;;  %v197_v57 = vmul.f32 %v2011_v44, %v48_v38 }
  0xff   :  { %458 = vst.msk [vmem:[#allocation5] sm:$0xff] %vm457_vm3, %v441_v9  ;;  %v147_v4 = vpop.permute.xlu2 %146  ;;  %v125_v63 = vpop.permute.xlu1 %124  ;;  %v438_v31 = vadd.f32 %v422_v15, %v389_v12  ;;  %v2371_v56 = vmul.f32 %v2356_v58, %v2011_v44  ;;  %v666_v54 = vmul.f32 %v2107_v45, %v1917_v3  ;;  %v2380_v12 = vmul.f32 %v2362_v37, %v2011_v44 }
 0x100   :  { %v302_v25 = vadd.f32 %v2161_v0, %v189_v17  ;;  %v181_v34 = vadd.f32 %v147_v4, %v2329_v32  ;;  %v170_v26 = vadd.f32 %v125_v63, %v2337_v35  ;;  %v131_v41 = vpop.permute.xlu0 %130  ;;  %v310_v1 = vadd.f32 %v2256_v10, %v197_v57  ;;  %v2413_v63 = vld [vmem:[#allocation2 + $0x50] sm:$0xff] }
 0x101   :  { %v173_v48 = vadd.f32 %v131_v41, %v2346_v61  ;;  %v2384_v10 = vmul.f32 %v2055_v2, %v1917_v3  ;;  %v350_v9 = vmul.f32 %v2055_v2, %v2159_v60  ;;  %v351_v17 = vmul.f32 %v43_v5, %v2159_v60 }
 0x102   :  { %v327_v0 = vsel %vm313_vm0, %v181_v34, %v48_v38  ;;  %v316_v15 = vsel %vm313_vm0, %v170_v26, %v2247_v19  ;;  %v367_v38 = vmul.f32 %v359_v16, %v2168_v8  ;;  %v192_v4 = vmul.f32 %v2011_v44, %v43_v5  ;;  %v2416_v26 = vld [vmem:[#allocation2 + $0x70] sm:$0xff] }
 0x103   :  { %v344_v47 = vsel %vm330_vm1, %v327_v0, %v310_v1  ;;  %v333_v27 = vsel %vm330_vm1, %v316_v15, %v299_v23  ;;  %v319_v45 = vsel %vm313_vm0, %v173_v48, %v2285_v39  ;;  %v2403_v39 = vmul.f32 %v43_v5, %v1917_v3  ;;  %v2420_v48 = vld [vmem:[#allocation2 + $0x60] sm:$0xff] }
 0x104   :  { %v455_v19 = vsel %vm440_vm2, %v344_v47, %v438_v31  ;;  %v442_v7 = vsel %vm440_vm2, %v373_v55, %v333_v27  ;;  %v336_v22 = vsel %vm330_vm1, %v319_v45, %v302_v25  ;;  %v405_v55 = vmul.f32 %v397_v11, %v2159_v60  ;;  %v46_v45 = vld [vmem:[#allocation2 + $0x198] sm:$0xff] }
 0x105   :  { %471 = vst.msk [vmem:[#allocation5 + $0x1a8] sm:$0xff] %vm457_vm3, %v455_v19  ;;  %v451_v23 = vsel %vm440_vm2, %v336_v22, %v434_v29  ;;  %882 = vrot.lane.b32.xlu2 %v2371_v56, %s1898_s13  ;;  %713 = vrot.lane.b32.xlu1 %v666_v54, %s1897_s0  ;;  %v375_v31 = vadd.f32 %v367_v38, %v350_v9  ;;  %v420_v41 = vrot.slane %v2350_v13, 4  ;;  %v362_v22 = vld [vmem:[#allocation2 + $0x2a0] sm:$0xf]  ;;  %v363_v9 = vld [vmem:[#allocation2 + $0x2b0] sm:$0xf] }
 0x106   :  { %460 = vst.msk [vmem:[#allocation5 + $0x10] sm:$0xff] %vm457_vm3, %v442_v7  ;;  %878 = vrot.lane.b32.xlu0 %v2380_v12, %s1898_s13  ;;  %v376_v16 = vadd.f32 %v368_v33, %v351_v17  ;;  %v387_v54 = vmul.f32 %v2178_v42, %v2003_v40  ;;  %v305_v0 = vadd.f32 %v2187_v36, %v192_v4  ;;  %v421_v15 = vrot.slane %v405_v55, 4  ;;  %v2462_v4 = vld [vmem:[#allocation2 + $0x68] sm:$0xff] }
 0x107   :  { %463 = vst.msk [vmem:[#allocation5 + $0x28] sm:$0xff] %vm457_vm3, %v451_v23  ;;  %v2410_v57 = vpop.permute.xlu2 %559  ;;  %v133_v29 = vpop.permute.xlu1 %132  ;;  %v2432_v13 = vmul.f32 %v2416_v26, %v2011_v44  ;;  %v2436_v33 = vmul.f32 %v2413_v63, %v2011_v44  ;;  %v2454_v7 = vmul.f32 %v46_v45, %v1917_v3 }
 0x108   :  { %v174_v25 = vadd.f32 %v133_v29, %v2384_v10  ;;  %v137_v34 = vpop.permute.xlu0 %136  ;;  %v436_v55 = vadd.f32 %v420_v41, %v387_v54  ;;  %v195_v29 = vmul.f32 %v2011_v44, %v46_v45  ;;  %v371_v54 = vmul.f32 %v363_v9, %v2168_v8 }
 0x109   :  { %v176_v1 = vadd.f32 %v137_v34, %v2403_v39  ;;  %v2464_v34 = vld [vmem:[#allocation2 + $0x1c8] sm:$0xff] }
 0x10a   :  { %v320_v11 = vsel %vm313_vm0, %v174_v25, %v2055_v2  ;;  %v2442_v2 = vmul.f32 %v2420_v48, %v2011_v44  ;;  %v308_v41 = vadd.f32 %v2218_v21, %v195_v29  ;;  %v49_v21 = vld [vmem:[#allocation2 + $0x1b0] sm:$0xff] }
 0x10b   :  { %v337_v47 = vsel %vm330_vm1, %v320_v11, %v2075_v18  ;;  %v322_v27 = vsel %vm313_vm0, %v176_v1, %v43_v5  ;;  %v60_v18 = vmul.f32 %v2003_v40, %v1917_v3  ;;  %v388_v5 = vmul.f32 %v2178_v42, %v46_v45  ;;  %v2468_v11 = vld [vmem:[#allocation2 + $0x78] sm:$0xff] }
 0x10c   :  { %v444_v36 = vsel %vm440_vm2, %v375_v31, %v337_v47  ;;  %v339_v38 = vsel %vm330_vm1, %v322_v27, %v305_v0  ;;  %v353_v47 = vmul.f32 %v2026_v51, %v2159_v60 }
 0x10d   :  { %464 = vst.msk [vmem:[#allocation5 + $0x30] sm:$0xff] %vm457_vm3, %v444_v36  ;;  %v445_v19 = vsel %vm440_vm2, %v376_v16, %v339_v38  ;;  %888 = vrot.lane.b32.xlu2 %v2432_v13, %s1898_s13  ;;  %880 = vrot.lane.b32.xlu1 %v2436_v33, %s1898_s13  ;;  %v370_v16 = vmul.f32 %v362_v22, %v2168_v8  ;;  %v399_v36 = vld [vmem:[#allocation2 + $0x2f0] sm:$0xf] }
 0x10e   :  { %466 = vst.msk [vmem:[#allocation5 + $0x180] sm:$0xff] %vm457_vm3, %v445_v19  ;;  %884 = vrot.lane.b32.xlu0 %v2442_v2, %s1898_s13  ;;  %v437_v1 = vadd.f32 %v421_v15, %v388_v5  ;;  %v2485_v5 = vmul.f32 %v2462_v4, %v2011_v44 }
 0x10f   :  { %v2459_v17 = vpop.permute.xlu2 %565  ;;  %v139_v23 = vpop.permute.xlu1 %138 }
 0x110   :  { %v177_v25 = vadd.f32 %v139_v23, %v60_v18  ;;  %v143_v31 = vpop.permute.xlu0 %142  ;;  %v2481_v18 = vmul.f32 %v2464_v34, %v2011_v44  ;;  %v2503_v23 = vmul.f32 %v49_v21, %v1917_v3 }
 0x111   :  { %v179_v0 = vadd.f32 %v143_v31, %v2454_v7  ;;  %v378_v31 = vadd.f32 %v370_v16, %v353_v47 }
 0x112   :  { %v323_v27 = vsel %vm313_vm0, %v177_v25, %v2003_v40  ;;  %v2491_v40 = vmul.f32 %v2468_v11, %v2011_v44 }
 0x113   :  { %v340_v38 = vsel %vm330_vm1, %v323_v27, %v2021_v50  ;;  %v325_v15 = vsel %vm313_vm0, %v179_v0, %v46_v45  ;;  %v63_v50 = vmul.f32 %v2026_v51, %v1917_v3  ;;  %v354_v45 = vmul.f32 %v49_v21, %v2159_v60  ;;  %v2512_v0 = vld [vmem:[#allocation2 + $0x1c0] sm:$0xff] }
 0x114   :  { %v453_v19 = vsel %vm440_vm2, %v340_v38, %v436_v55  ;;  %v342_v22 = vsel %vm330_vm1, %v325_v15, %v308_v41  ;;  %v407_v55 = vmul.f32 %v399_v36, %v2159_v60  ;;  %v2514_v38 = vld [vmem:[#allocation2 + $0x1e0] sm:$0xff]  ;;  %v50_v15 = vld [vmem:[#allocation2 + $0x1b8] sm:$0xff] }
 0x115   :  { %467 = vst.msk [vmem:[#allocation5 + $0x188] sm:$0xff] %vm457_vm3, %v453_v19  ;;  %v454_v9 = vsel %vm440_vm2, %v342_v22, %v437_v1  ;;  %894 = vrot.lane.b32.xlu2 %v2481_v18, %s1898_s13  ;;  %886 = vrot.lane.b32.xlu1 %v2485_v5, %s1898_s13  ;;  %v198_v1 = vmul.f32 %v2011_v44, %v49_v21  ;;  %v2517_v22 = vld [vmem:[#allocation2 + $0x1d0] sm:$0xff] }
 0x116   :  { %469 = vst.msk [vmem:[#allocation5 + $0x198] sm:$0xff] %vm457_vm3, %v454_v9  ;;  %890 = vrot.lane.b32.xlu0 %v2491_v40, %s1898_s13  ;;  %v379_v19 = vadd.f32 %v371_v54, %v354_v45  ;;  %v423_v9 = vrot.slane %v407_v55, 4  ;;  %v390_v8 = vmul.f32 %v2178_v42, %v50_v15  ;;  %v2528_v54 = vmul.f32 %v2514_v38, %v2011_v44 }
 0x117   :  { %v2509_v29 = vpop.permute.xlu2 %571  ;;  %v145_v25 = vpop.permute.xlu1 %144  ;;  %v311_v60 = vadd.f32 %v2250_v49, %v198_v1  ;;  %v2532_v45 = vmul.f32 %v2512_v0, %v2011_v44 }
 0x118   :  { %v180_v41 = vadd.f32 %v145_v25, %v63_v50  ;;  %v149_v27 = vpop.permute.xlu0 %148  ;;  %v439_v1 = vadd.f32 %v423_v9, %v390_v8 }
 0x119   :  { %v182_v36 = vadd.f32 %v149_v27, %v2503_v23 }
 0x11a   :  { %v326_v16 = vsel %vm313_vm0, %v180_v41, %v2026_v51  ;;  %v2538_v51 = vmul.f32 %v2517_v22, %v2011_v44  ;;  %v2553_v41 = vld [vmem:[#allocation2 + $0x1d8] sm:$0xff] }
 0x11b   :  { %v343_v47 = vsel %vm330_vm1, %v326_v16, %v2040_v59  ;;  %v328_v50 = vsel %vm313_vm0, %v182_v36, %v49_v21  ;;  %v66_v59 = vmul.f32 %v50_v15, %v1917_v3  ;;  %v2557_v36 = vld [vmem:[#allocation2 + $0x1f8] sm:$0xff]  ;;  %v2570_v8 = vmul.f32 %v2553_v41, %v2011_v44 }
 0x11c   :  { %v447_v55 = vsel %vm440_vm2, %v378_v31, %v343_v47  ;;  %v345_v49 = vsel %vm330_vm1, %v328_v50, %v311_v60  ;;  %v199_v60 = vmul.f32 %v2011_v44, %v50_v15  ;;  %v2560_v47 = vld [vmem:[#allocation2 + $0x1e8] sm:$0xff] }
 0x11d   :  { %470 = vst.msk [vmem:[#allocation5 + $0x1a0] sm:$0xff] %vm457_vm3, %v447_v55  ;;  %v448_v21 = vsel %vm440_vm2, %v379_v19, %v345_v49  ;;  %900 = vrot.lane.b32.xlu2 %v2528_v54, %s1898_s13  ;;  %892 = vrot.lane.b32.xlu1 %v2532_v45, %s1898_s13  ;;  %v2566_v49 = vmul.f32 %v2557_v36, %v2011_v44 }
 0x11e   :  { %472 = vst.msk [vmem:[#allocation5 + $0x1b0] sm:$0xff] %vm457_vm3, %v448_v21  ;;  %896 = vrot.lane.b32.xlu0 %v2538_v51, %s1898_s13  ;;  %v312_v16 = vadd.f32 %v2175_v14, %v199_v60  ;;  %v2586_v21 = vld [vmem:[#allocation2 + $0x1f0] sm:$0xff] }
 0x11f   :  { %v2551_v25 = vpop.permute.xlu2 %577  ;;  %v151_v31 = vpop.permute.xlu1 %150 }
 0x120   :  { %v183_v27 = vadd.f32 %v151_v31, %v66_v59  ;;  %v2555_v19 = vpop.permute.xlu0 %555  ;;  %v2575_v59 = vmul.f32 %v2560_v47, %v2011_v44  ;;  %v2592_v31 = vmul.f32 %v2362_v37, %v1917_v3 }
 0x122   :  { %v329_v50 = vsel %vm313_vm0, %v183_v27, %v50_v15  ;;  %3495 = vst [vmem:[#allocation11_spill] sm:$0xff] %v2592_v31 }
 0x123   :  { %v346_v55 = vsel %vm330_vm1, %v329_v50, %v312_v16 }
 0x124   :  { %v456_v9 = vsel %vm440_vm2, %v346_v55, %v439_v1  ;;  %v2596_v1 = vmul.f32 %v2586_v21, %v2011_v44 }
 0x125   :  { %473 = vst.msk [vmem:[#allocation5 + $0x1b8] sm:$0xff] %vm457_vm3, %v456_v9  ;;  %906 = vrot.lane.b32.xlu2 %v2566_v49, %s1898_s13  ;;  %898 = vrot.lane.b32.xlu1 %v2570_v8, %s1898_s13 }
 0x126   :  { %902 = vrot.lane.b32.xlu0 %v2575_v59, %s1898_s13 }
 0x127   :  { %v2584_v14 = vpop.permute.xlu2 %583  ;;  %v558_v15 = vpop.permute.xlu1 %557 }
 0x128   :  { %v2588_v60 = vpop.permute.xlu0 %561  ;;  %v604_v27 = vadd.f32 %v558_v15, %v2592_v31  ;;  %v2612_v15 = vmul.f32 %v2420_v48, %v1917_v3 }
 0x12a   :  { %v748_v42 = vsel %vm313_vm0, %v604_v27, %v2362_v37 }
 0x12d   :  { %1008 = vrot.lane.b32.xlu2 %v2337_v35, %s1897_s0  ;;  %904 = vrot.lane.b32.xlu1 %v2596_v1, %s1898_s13 }
 0x12e   :  { %1004 = vrot.lane.b32.xlu0 %v2293_v52, %s1897_s0 }
 0x12f   :  { %v686_v16 = vpop.permute.xlu2 %685  ;;  %v564_v50 = vpop.permute.xlu1 %563 }
 0x130   :  { %v732_v55 = vadd.f32 %v2380_v12, %v686_v16  ;;  %v2606_v9 = vpop.permute.xlu0 %567  ;;  %v607_v31 = vadd.f32 %v564_v50, %v2612_v15  ;;  %v2630_v16 = vmul.f32 %v2468_v11, %v1917_v3 }
 0x132   :  { %v764_v35 = vsel %vm330_vm1, %v748_v42, %v732_v55  ;;  %v751_v42 = vsel %vm313_vm0, %v607_v31, %v2420_v48  ;;  %v2648_v55 = vmul.f32 %v2517_v22, %v1917_v3 }
 0x133   :  { %781 = vst.msk [vmem:[#allocation5 + $0x48] sm:$0xff] %vm457_vm3, %v764_v35 }
 0x135   :  { %1014 = vrot.lane.b32.xlu2 %v2346_v61, %s1897_s0  ;;  %1006 = vrot.lane.b32.xlu1 %v2283_v24, %s1897_s0 }
 0x136   :  { %1010 = vrot.lane.b32.xlu0 %v2192_v46, %s1897_s0 }
 0x137   :  { %v692_v52 = vpop.permute.xlu2 %691  ;;  %v570_v37 = vpop.permute.xlu1 %569 }
 0x138   :  { %v735_v12 = vadd.f32 %v2442_v2, %v692_v52  ;;  %v2624_v27 = vpop.permute.xlu0 %573  ;;  %v610_v24 = vadd.f32 %v570_v37, %v2630_v16 }
 0x13a   :  { %v767_v61 = vsel %vm330_vm1, %v751_v42, %v735_v12  ;;  %v754_v50 = vsel %vm313_vm0, %v610_v24, %v2468_v11  ;;  %v2667_v12 = vmul.f32 %v2306_v28, %v1917_v3 }
 0x13b   :  { %784 = vst.msk [vmem:[#allocation5 + $0x60] sm:$0xff] %vm457_vm3, %v767_v61  ;;  %v2679_v61 = vmul.f32 %v2413_v63, %v1917_v3 }
 0x13d   :  { %1020 = vrot.lane.b32.xlu2 %v2403_v39, %s1897_s0  ;;  %1012 = vrot.lane.b32.xlu1 %v2216_v62, %s1897_s0  ;;  %v2650_v39 = vld [vmem:[#allocation2 + $0x188] sm:$0xff] }
 0x13e   :  { %1016 = vrot.lane.b32.xlu0 %v2384_v10, %s1897_s0  ;;  %v981_v10 = vmul.f32 %v2650_v39, %v1917_v3 }
 0x13f   :  { %v698_v46 = vpop.permute.xlu2 %697  ;;  %v576_v48 = vpop.permute.xlu1 %575 }
 0x140   :  { %v738_v2 = vadd.f32 %v2491_v40, %v698_v46  ;;  %v2642_v31 = vpop.permute.xlu0 %579  ;;  %v613_v40 = vadd.f32 %v576_v48, %v2648_v55  ;;  %v605_v48 = vadd.f32 %v2410_v57, %v2679_v61  ;;  %v2705_v57 = vmul.f32 %v2356_v58, %v1917_v3 }
 0x142   :  { %v770_v62 = vsel %vm330_vm1, %v754_v50, %v738_v2  ;;  %v757_v42 = vsel %vm313_vm0, %v613_v40, %v2517_v22  ;;  %v603_v22 = vadd.f32 %v2555_v19, %v2667_v12 }
 0x143   :  { %787 = vst.msk [vmem:[#allocation5 + $0x78] sm:$0xff] %vm457_vm3, %v770_v62  ;;  %v2697_v62 = vmul.f32 %v2462_v4, %v1917_v3 }
 0x145   :  { %1026 = vrot.lane.b32.xlu2 %v2454_v7, %s1897_s0  ;;  %1018 = vrot.lane.b32.xlu1 %v2240_v53, %s1897_s0  ;;  %v2673_v7 = vmul.f32 %v2560_v47, %v1917_v3  ;;  %v2675_v53 = vld [vmem:[#allocation2 + $0x1a0] sm:$0xff] }
 0x146   :  { %1022 = vrot.lane.b32.xlu0 %v981_v10, %s1897_s0  ;;  %v984_v24 = vmul.f32 %v2675_v53, %v1917_v3 }
 0x147   :  { %v704_v11 = vpop.permute.xlu2 %703  ;;  %v582_v35 = vpop.permute.xlu1 %581 }
 0x148   :  { %v741_v52 = vadd.f32 %v2538_v51, %v704_v11  ;;  %v2663_v37 = vpop.permute.xlu0 %585  ;;  %v616_v46 = vadd.f32 %v582_v35, %v2673_v7 }
 0x14a   :  { %v773_v51 = vsel %vm330_vm1, %v757_v42, %v741_v52  ;;  %v760_v11 = vsel %vm313_vm0, %v616_v46, %v2560_v47  ;;  %v2710_v52 = vld [vmem:[#allocation2 + $0x1b8] sm:$0xff] }
 0x14b   :  { %790 = vst.msk [vmem:[#allocation5 + $0x1d0] sm:$0xff] %vm457_vm3, %v773_v51 }
 0x14d   :  { %1032 = vrot.lane.b32.xlu2 %v2503_v23, %s1897_s0  ;;  %1024 = vrot.lane.b32.xlu1 %v2280_v30, %s1897_s0  ;;  %v1254_v23 = vld [vmem:[#allocation2 + $0x8] sm:$0xff]  ;;  %v747_v30 = vsel %vm313_vm0, %v603_v22, %v2306_v28  ;;  %v987_v28 = vmul.f32 %v2710_v52, %v1917_v3 }
 0x14e   :  { %1028 = vrot.lane.b32.xlu0 %v984_v24, %s1897_s0  ;;  %v1270_v47 = vmul.f32 %v1254_v23, %v2011_v44 }
 0x14f   :  { %v710_v2 = vpop.permute.xlu2 %709  ;;  %v684_v50 = vpop.permute.xlu1 %683 }
 0x150   :  { %v744_v19 = vadd.f32 %v2575_v59, %v710_v2  ;;  %v731_v10 = vadd.f32 %v2320_v20, %v684_v50  ;;  %v688_v40 = vpop.permute.xlu0 %687  ;;  %v749_v59 = vsel %vm313_vm0, %v605_v48, %v2413_v63  ;;  %v608_v63 = vadd.f32 %v2459_v17, %v2697_v62  ;;  %v1257_v2 = vld [vmem:[#allocation2 + $0x20] sm:$0xff] }
 0x151   :  { %v733_v35 = vadd.f32 %v2436_v33, %v688_v40  ;;  %v606_v33 = vadd.f32 %v2588_v60, %v2705_v57  ;;  %v2738_v50 = vmul.f32 %v2416_v26, %v1917_v3  ;;  %v1273_v40 = vmul.f32 %v1257_v2, %v2011_v44  ;;  %v1263_v2 = vld [vmem:[#allocation2 + $0x190] sm:$0xff] }
 0x152   :  { %v776_v20 = vsel %vm330_vm1, %v760_v11, %v744_v19  ;;  %v763_v42 = vsel %vm330_vm1, %v747_v30, %v731_v10  ;;  %v1255_v19 = vld [vmem:[#allocation2 + $0x10] sm:$0xff]  ;;  %v752_v17 = vsel %vm313_vm0, %v608_v63, %v2462_v4  ;;  %v2745_v10 = vmul.f32 %v2512_v0, %v1917_v3 }
 0x153   :  { %793 = vst.msk [vmem:[#allocation5 + $0x1e8] sm:$0xff] %vm457_vm3, %v776_v20  ;;  %v765_v51 = vsel %vm330_vm1, %v749_v59, %v733_v35  ;;  %v750_v60 = vsel %vm313_vm0, %v606_v33, %v2356_v58  ;;  %v609_v23 = vadd.f32 %v2606_v9, %v2738_v50  ;;  %v1260_v20 = vld [vmem:[#allocation2 + $0x38] sm:$0xff] }
 0x154   :  { %780 = vst.msk [vmem:[#allocation5 + $0x40] sm:$0xff] %vm457_vm3, %v763_v42  ;;  %v611_v4 = vadd.f32 %v2509_v29, %v2745_v10  ;;  %v2768_v42 = vmul.f32 %v2464_v34, %v1917_v3 }
 0x155   :  { %782 = vst.msk [vmem:[#allocation5 + $0x50] sm:$0xff] %vm457_vm3, %v765_v51  ;;  %1303 = vrot.lane.b32.xlu2 %v1270_v47, %s1898_s13  ;;  %1030 = vrot.lane.b32.xlu1 %v2329_v32, %s1897_s0  ;;  %v753_v9 = vsel %vm313_vm0, %v609_v23, %v2416_v26  ;;  %v2775_v51 = vmul.f32 %v2553_v41, %v1917_v3 }
 0x156   :  { %1034 = vrot.lane.b32.xlu0 %v987_v28, %s1897_s0  ;;  %v1258_v28 = vld [vmem:[#allocation2 + $0x28] sm:$0xff]  ;;  %v755_v29 = vsel %vm313_vm0, %v611_v4, %v2512_v0  ;;  %v1276_v47 = vmul.f32 %v1260_v20, %v2011_v44  ;;  %v612_v33 = vadd.f32 %v2624_v27, %v2768_v42 }
 0x157   :  { %v2731_v24 = vpop.permute.xlu2 %876  ;;  %v690_v22 = vpop.permute.xlu1 %689  ;;  %v614_v0 = vadd.f32 %v2551_v25, %v2775_v51 }
 0x158   :  { %v734_v46 = vadd.f32 %v2371_v56, %v690_v22  ;;  %v694_v48 = vpop.permute.xlu0 %693  ;;  %v756_v27 = vsel %vm313_vm0, %v612_v33, %v2464_v34 }
 0x159   :  { %v736_v32 = vadd.f32 %v2485_v5, %v694_v48  ;;  %v1271_v5 = vmul.f32 %v1255_v19, %v2011_v44  ;;  %v758_v25 = vsel %vm313_vm0, %v614_v0, %v2553_v41  ;;  %v2805_v19 = vmul.f32 %v2586_v21, %v1917_v3 }
 0x15a   :  { %v766_v56 = vsel %vm330_vm1, %v750_v60, %v734_v46  ;;  %v2798_v60 = vmul.f32 %v2514_v38, %v1917_v3 }
 0x15b   :  { %783 = vst.msk [vmem:[#allocation5 + $0x58] sm:$0xff] %vm457_vm3, %v766_v56  ;;  %v768_v58 = vsel %vm330_vm1, %v752_v17, %v736_v32  ;;  %v1261_v32 = vld [vmem:[#allocation2 + $0x180] sm:$0xff]  ;;  %v1279_v17 = vmul.f32 %v1263_v2, %v2011_v44  ;;  %v1841_v56 = vld [vmem:[#allocation2 + $0x30] sm:$0xff] }
 0x15c   :  { %785 = vst.msk [vmem:[#allocation5 + $0x68] sm:$0xff] %vm457_vm3, %v768_v58  ;;  %v1275_v58 = vmul.f32 %v1841_v56, %v2011_v44  ;;  %v615_v41 = vadd.f32 %v2642_v31, %v2798_v60  ;;  %v2828_v31 = vmul.f32 %v2557_v36, %v1917_v3 }
 0x15d   :  { %1309 = vrot.lane.b32.xlu2 %v1273_v40, %s1898_s13  ;;  %1301 = vrot.lane.b32.xlu1 %v2059_v6, %s1898_s13  ;;  %v617_v40 = vadd.f32 %v2584_v14, %v2805_v19 }
 0x15e   :  { %1305 = vrot.lane.b32.xlu0 %v1271_v5, %s1898_s13 }
 0x15f   :  { %v2761_v30 = vpop.permute.xlu2 %882  ;;  %v696_v11 = vpop.permute.xlu1 %695  ;;  %v761_v14 = vsel %vm313_vm0, %v617_v40, %v2586_v21  ;;  %v801_v40 = vld [vmem:[#allocation2 + $0xa8] sm:$0xff] }
 0x160   :  { %v737_v35 = vadd.f32 %v2432_v13, %v696_v11  ;;  %v700_v59 = vpop.permute.xlu0 %699 }
 0x161   :  { %v739_v6 = vadd.f32 %v2532_v45, %v700_v59  ;;  %v1274_v45 = vmul.f32 %v1258_v28, %v2011_v44  ;;  %v759_v59 = vsel %vm313_vm0, %v615_v41, %v2514_v38  ;;  %v1278_v38 = vmul.f32 %v2650_v39, %v2011_v44 }
 0x162   :  { %v769_v13 = vsel %vm330_vm1, %v753_v9, %v737_v35  ;;  %v1266_v35 = vld [vmem:[#allocation2 + $0x1a8] sm:$0xff]  ;;  %v1264_v9 = vld [vmem:[#allocation2 + $0x198] sm:$0xff] }
 0x163   :  { %786 = vst.msk [vmem:[#allocation5 + $0x70] sm:$0xff] %vm457_vm3, %v769_v13  ;;  %v771_v26 = vsel %vm330_vm1, %v755_v29, %v739_v6  ;;  %v1282_v28 = vmul.f32 %v1266_v35, %v2011_v44  ;;  %v1280_v29 = vmul.f32 %v1264_v9, %v2011_v44 }
 0x164   :  { %788 = vst.msk [vmem:[#allocation5 + $0x1c0] sm:$0xff] %vm457_vm3, %v771_v26 }
 0x165   :  { %1315 = vrot.lane.b32.xlu2 %v1276_v47, %s1898_s13  ;;  %1307 = vrot.lane.b32.xlu1 %v2198_v43, %s1898_s13 }
 0x166   :  { %1311 = vrot.lane.b32.xlu0 %v1274_v45, %s1898_s13  ;;  %v1267_v45 = vld [vmem:[#allocation2 + $0x1b0] sm:$0xff] }
 0x167   :  { %v2791_v63 = vpop.permute.xlu2 %888  ;;  %v702_v22 = vpop.permute.xlu1 %701  ;;  %v1283_v0 = vmul.f32 %v1267_v45, %v2011_v44 }
 0x168   :  { %v740_v46 = vadd.f32 %v2481_v18, %v702_v22  ;;  %v706_v48 = vpop.permute.xlu0 %705  ;;  %v798_v22 = vld [vmem:[#allocation2 + $0x90] sm:$0xff] }
 0x169   :  { %v742_v43 = vadd.f32 %v2570_v8, %v706_v48  ;;  %v1277_v8 = vmul.f32 %v1261_v32, %v2011_v44  ;;  %v1109_v48 = vld [vmem:[#allocation2 + $0x11c] sm:$0xf]  ;;  %v814_v2 = vmul.f32 %v798_v22, %v1917_v3  ;;  %v3497_v32 = vld [vmem:[#allocation9_spill] sm:$0xff] }
 0x16a   :  { %v772_v18 = vsel %vm330_vm1, %v756_v27, %v740_v46  ;;  %v3496_v27 = vld [vmem:[#allocation8_spill] sm:$0xff] }
 0x16b   :  { %789 = vst.msk [vmem:[#allocation5 + $0x1c8] sm:$0xff] %vm457_vm3, %v772_v18  ;;  %v774_v34 = vsel %vm330_vm1, %v758_v25, %v742_v43  ;;  %v1284_v43 = vmul.f32 %v2710_v52, %v2011_v44  ;;  %v1142_v25 = vld [vmem:[#allocation2 + $0x16c] sm:$0xf] }
 0x16c   :  { %791 = vst.msk [vmem:[#allocation5 + $0x1d8] sm:$0xff] %vm457_vm3, %v774_v34  ;;  %v3498_v34 = vld [vmem:[#allocation11_spill] sm:$0xff]  ;;  %v1150_v41 = vmul.f32 %v1142_v25, %v3496_v27 }
 0x16d   :  { %1321 = vrot.lane.b32.xlu2 %v1279_v17, %s1898_s13  ;;  %1313 = vrot.lane.b32.xlu1 %v1275_v58, %s1898_s13  ;;  %v942_v17 = vmul.f32 %v798_v22, %v2011_v44 }
 0x16e   :  { %1317 = vrot.lane.b32.xlu0 %v1277_v8, %s1898_s13  ;;  %v1166_v9 = vrot.slane %v1150_v41, 4 }
 0x16f   :  { %v2821_v5 = vpop.permute.xlu2 %894  ;;  %v708_v23 = vpop.permute.xlu1 %707 }
 0x170   :  { %v743_v4 = vadd.f32 %v2528_v54, %v708_v23  ;;  %v712_v11 = vpop.permute.xlu0 %711 }
 0x171   :  { %v745_v20 = vadd.f32 %v2596_v1, %v712_v11  ;;  %v618_v1 = vadd.f32 %v2663_v37, %v2828_v31  ;;  %v1281_v37 = vmul.f32 %v2675_v53, %v2011_v44  ;;  %v1101_v53 = vmul.f32 %v798_v22, %v3496_v27 }
 0x172   :  { %v775_v6 = vsel %vm330_vm1, %v759_v59, %v743_v4  ;;  %v3499_v59 = vld [vmem:[#allocation10_spill] sm:$0xff] }
 0x173   :  { %792 = vst.msk [vmem:[#allocation5 + $0x1e0] sm:$0xff] %vm457_vm3, %v775_v6  ;;  %v777_v54 = vsel %vm330_vm1, %v761_v14, %v745_v20  ;;  %v762_v39 = vsel %vm313_vm0, %v618_v1, %v2557_v36  ;;  %v1134_v20 = vmul.f32 %v801_v40, %v3499_v59  ;;  %v945_v6 = vmul.f32 %v801_v40, %v2011_v44  ;;  %v804_v1 = vld [vmem:[#allocation2 + $0x200] sm:$0xff] }
 0x174   :  { %794 = vst.msk [vmem:[#allocation5 + $0x1f0] sm:$0xff] %vm457_vm3, %v777_v54 }
 0x175   :  { %1327 = vrot.lane.b32.xlu2 %v1282_v28, %s1898_s13  ;;  %1319 = vrot.lane.b32.xlu1 %v1278_v38, %s1898_s13  ;;  %v1182_v54 = vadd.f32 %v1166_v9, %v1134_v20  ;;  %v799_v20 = vld [vmem:[#allocation2 + $0x98] sm:$0xff] }
 0x176   :  { %1323 = vrot.lane.b32.xlu0 %v1280_v29, %s1898_s13 }
 0x177   :  { %v2846_v21 = vpop.permute.xlu2 %900  ;;  %v714_v13 = vpop.permute.xlu1 %713 }
 0x178   :  { %v746_v26 = vadd.f32 %v2566_v49, %v714_v13  ;;  %v2849_v47 = vpop.permute.xlu0 %878 }
 0x17a   :  { %v778_v33 = vsel %vm330_vm1, %v762_v39, %v746_v26  ;;  %v1112_v26 = vld [vmem:[#allocation2 + $0x28c] sm:$0xf] }
 0x17b   :  { %795 = vst.msk [vmem:[#allocation5 + $0x1f8] sm:$0xff] %vm457_vm3, %v778_v33  ;;  %v1120_v33 = vmul.f32 %v1112_v26, %v3497_v32  ;;  %v1115_v26 = vld [vmem:[#allocation2 + $0x2bc] sm:$0xf] }
 0x17d   :  { %1429 = vrot.lane.b32.xlu2 %v2667_v12, %s1897_s0  ;;  %1325 = vrot.lane.b32.xlu1 %v1281_v37, %s1898_s13  ;;  %v1117_v12 = vmul.f32 %v1109_v48, %v3497_v32  ;;  %v1145_v37 = vld [vmem:[#allocation2 + $0x2dc] sm:$0xf] }
 0x17e   :  { %1329 = vrot.lane.b32.xlu0 %v1283_v0, %s1898_s13 }
 0x17f   :  { %v2862_v49 = vpop.permute.xlu2 %906  ;;  %v881_v36 = vpop.permute.xlu1 %880  ;;  %v1125_v56 = vadd.f32 %v1117_v12, %v1101_v53  ;;  %v1153_v53 = vmul.f32 %v1145_v37, %v3496_v27  ;;  %v807_v12 = vld [vmem:[#allocation2 + $0x218] sm:$0xff] }
 0x180   :  { %v2864_v46 = vpop.permute.xlu0 %884  ;;  %v926_v18 = vadd.f32 %v881_v36, %v814_v2  ;;  %v948_v36 = vmul.f32 %v804_v1, %v2011_v44 }
 0x182   :  { %v1070_v4 = vsel %vm313_vm0, %v926_v18, %v798_v22  ;;  %v796_v18 = vld [vmem:[#allocation2 + $0x80] sm:$0xff] }
 0x183   :  { %v1100_v41 = vmul.f32 %v796_v18, %v3496_v27 }
 0x185   :  { %1435 = vrot.lane.b32.xlu2 %v2705_v57, %s1897_s0  ;;  %1331 = vrot.lane.b32.xlu1 %v1284_v43, %s1898_s13  ;;  %v817_v57 = vmul.f32 %v801_v40, %v1917_v3 }
 0x186   :  { %1431 = vrot.lane.b32.xlu0 %v3498_v34, %s1897_s0  ;;  %v823_v34 = vmul.f32 %v807_v12, %v1917_v3 }
 0x187   :  { %v1009_v58 = vpop.permute.xlu2 %1008  ;;  %v887_v8 = vpop.permute.xlu1 %886 }
 0x188   :  { %v1054_v52 = vadd.f32 %v1009_v58, %v942_v17  ;;  %v2878_v23 = vpop.permute.xlu0 %890  ;;  %v929_v14 = vadd.f32 %v887_v8, %v817_v57  ;;  %v812_v17 = vmul.f32 %v796_v18, %v1917_v3  ;;  %v1137_v58 = vmul.f32 %v807_v12, %v3499_v59  ;;  %v1141_v57 = vld [vmem:[#allocation2 + $0x15c] sm:$0xf] }
 0x189   :  { %v1169_v8 = vrot.slane %v1153_v53, 4  ;;  %v1133_v53 = vmul.f32 %v799_v20, %v3499_v59 }
 0x18a   :  { %v1086_v11 = vsel %vm330_vm1, %v1070_v4, %v1054_v52  ;;  %v1073_v39 = vsel %vm313_vm0, %v929_v14, %v801_v40  ;;  %v1140_v40 = vld [vmem:[#allocation2 + $0x14c] sm:$0xf] }
 0x18b   :  { %v1189_v35 = vsel %vm440_vm2, %v1125_v56, %v1086_v11  ;;  %v924_v11 = vadd.f32 %v2731_v24, %v812_v17  ;;  %v1185_v9 = vadd.f32 %v1169_v8, %v1137_v58 }
 0x18c   :  { %1207 = vst.msk [vmem:[#allocation5 + $0x90] sm:$0xff] %vm457_vm3, %v1189_v35  ;;  %v951_v35 = vmul.f32 %v807_v12, %v2011_v44 }
 0x18d   :  { %1441 = vrot.lane.b32.xlu2 %v2738_v50, %s1897_s0  ;;  %1433 = vrot.lane.b32.xlu1 %v2679_v61, %s1897_s0  ;;  %v820_v50 = vmul.f32 %v804_v1, %v1917_v3 }
 0x18e   :  { %1437 = vrot.lane.b32.xlu0 %v2612_v15, %s1897_s0  ;;  %v1104_v15 = vmul.f32 %v804_v1, %v3496_v27 }
 0x18f   :  { %v1015_v28 = vpop.permute.xlu2 %1014  ;;  %v893_v38 = vpop.permute.xlu1 %892 }
 0x190   :  { %v1057_v29 = vadd.f32 %v1015_v28, %v945_v6  ;;  %v2893_v13 = vpop.permute.xlu0 %896  ;;  %v932_v0 = vadd.f32 %v893_v38, %v820_v50  ;;  %v1128_v22 = vadd.f32 %v1120_v33, %v1104_v15  ;;  %v1148_v28 = vmul.f32 %v1140_v40, %v3496_v27  ;;  %v797_v38 = vld [vmem:[#allocation2 + $0x88] sm:$0xff] }
 0x191   :  { %v1068_v15 = vsel %vm313_vm0, %v924_v11, %v796_v18  ;;  %v1132_v33 = vmul.f32 %v797_v38, %v3499_v59  ;;  %v941_v17 = vmul.f32 %v797_v38, %v2011_v44 }
 0x192   :  { %v1089_v45 = vsel %vm330_vm1, %v1073_v39, %v1057_v29  ;;  %v810_v29 = vld [vmem:[#allocation2 + $0x230] sm:$0xff]  ;;  %v813_v39 = vmul.f32 %v797_v38, %v1917_v3 }
 0x193   :  { %v1198_v61 = vsel %vm440_vm2, %v1089_v45, %v1182_v54  ;;  %v940_v54 = vmul.f32 %v796_v18, %v2011_v44  ;;  %v826_v45 = vmul.f32 %v810_v29, %v1917_v3 }
 0x194   :  { %1210 = vst.msk [vmem:[#allocation5 + $0xa8] sm:$0xff] %vm457_vm3, %v1198_v61  ;;  %v925_v18 = vadd.f32 %v2849_v47, %v813_v39 }
 0x195   :  { %1447 = vrot.lane.b32.xlu2 %v2768_v42, %s1897_s0  ;;  %1439 = vrot.lane.b32.xlu1 %v2697_v62, %s1897_s0  ;;  %v1076_v42 = vsel %vm313_vm0, %v932_v0, %v804_v1  ;;  %v1108_v62 = vld [vmem:[#allocation2 + $0x10c] sm:$0xf]  ;;  %v1107_v0 = vmul.f32 %v810_v29, %v3496_v27 }
 0x196   :  { %1443 = vrot.lane.b32.xlu0 %v2630_v16, %s1897_s0  ;;  %v1116_v52 = vmul.f32 %v1108_v62, %v3497_v32  ;;  %v954_v62 = vmul.f32 %v810_v29, %v2011_v44 }
 0x197   :  { %v1021_v48 = vpop.permute.xlu2 %1020  ;;  %v899_v2 = vpop.permute.xlu1 %898 }
 0x198   :  { %v1060_v43 = vadd.f32 %v1021_v48, %v948_v36  ;;  %v2910_v25 = vpop.permute.xlu0 %902  ;;  %v935_v4 = vadd.f32 %v899_v2, %v823_v34  ;;  %v1124_v1 = vadd.f32 %v1116_v52, %v1100_v41  ;;  %v1123_v48 = vmul.f32 %v1115_v26, %v3497_v32  ;;  %v800_v52 = vld [vmem:[#allocation2 + $0xa0] sm:$0xff] }
 0x199   :  { %v1164_v2 = vrot.slane %v1148_v28, 4  ;;  %v943_v41 = vmul.f32 %v799_v20, %v2011_v44  ;;  %v816_v11 = vmul.f32 %v800_v52, %v1917_v3 }
 0x19a   :  { %v1092_v16 = vsel %vm330_vm1, %v1076_v42, %v1060_v43  ;;  %v1079_v50 = vsel %vm313_vm0, %v935_v4, %v807_v12  ;;  %v1131_v47 = vadd.f32 %v1123_v48, %v1107_v0 }
 0x19b   :  { %v1192_v56 = vsel %vm440_vm2, %v1128_v22, %v1092_v16  ;;  %v802_v16 = vld [vmem:[#allocation2 + $0xb0] sm:$0xff]  ;;  %v1180_v58 = vadd.f32 %v1164_v2, %v1132_v33  ;;  %v928_v39 = vadd.f32 %v2864_v46, %v816_v11 }
 0x19c   :  { %1213 = vst.msk [vmem:[#allocation5 + $0x200] sm:$0xff] %vm457_vm3, %v1192_v56  ;;  %v946_v0 = vmul.f32 %v802_v16, %v2011_v44 }
 0x19d   :  { %1453 = vrot.lane.b32.xlu2 %v2798_v60, %s1897_s0  ;;  %1445 = vrot.lane.b32.xlu1 %v2745_v10, %s1897_s0  ;;  %v815_v60 = vmul.f32 %v799_v20, %v1917_v3 }
 0x19e   :  { %1449 = vrot.lane.b32.xlu0 %v2648_v55, %s1897_s0  ;;  %v1149_v55 = vmul.f32 %v1141_v57, %v3496_v27  ;;  %v1110_v57 = vld [vmem:[#allocation2 + $0x12c] sm:$0xf] }
 0x19f   :  { %v1027_v14 = vpop.permute.xlu2 %1026  ;;  %v905_v6 = vpop.permute.xlu1 %904  ;;  %v927_v34 = vadd.f32 %v2761_v30, %v815_v60 }
 0x1a0   :  { %v1063_v10 = vadd.f32 %v1027_v14, %v951_v35  ;;  %v1005_v24 = vpop.permute.xlu0 %1004  ;;  %v1165_v12 = vrot.slane %v1149_v55, 4  ;;  %v938_v42 = vadd.f32 %v905_v6, %v826_v45  ;;  %v1111_v14 = vld [vmem:[#allocation2 + $0x13c] sm:$0xf] }
 0x1a1   :  { %v1052_v61 = vadd.f32 %v1005_v24, %v940_v54  ;;  %v1071_v6 = vsel %vm313_vm0, %v927_v34, %v799_v20  ;;  %v1102_v54 = vmul.f32 %v800_v52, %v3496_v27  ;;  %v1118_v24 = vmul.f32 %v1110_v57, %v3497_v32  ;;  %v1143_v55 = vld [vmem:[#allocation2 + $0x17c] sm:$0xf]  ;;  %v806_v57 = vld [vmem:[#allocation2 + $0x210] sm:$0xff] }
 0x1a2   :  { %v1095_v37 = vsel %vm330_vm1, %v1079_v50, %v1063_v10  ;;  %v1181_v30 = vadd.f32 %v1165_v12, %v1133_v53  ;;  %v1082_v35 = vsel %vm313_vm0, %v938_v42, %v810_v29  ;;  %v1103_v29 = vmul.f32 %v802_v16, %v3496_v27  ;;  %v1144_v50 = vld [vmem:[#allocation2 + $0x2cc] sm:$0xf] }
 0x1a3   :  { %v1201_v36 = vsel %vm440_vm2, %v1095_v37, %v1185_v9  ;;  %v1084_v22 = vsel %vm330_vm1, %v1068_v15, %v1052_v61  ;;  %v1119_v26 = vmul.f32 %v1111_v14, %v3497_v32  ;;  %v944_v61 = vmul.f32 %v800_v52, %v2011_v44  ;;  %v805_v53 = vld [vmem:[#allocation2 + $0x208] sm:$0xff]  ;;  %v808_v14 = vld [vmem:[#allocation2 + $0x220] sm:$0xff] }
 0x1a4   :  { %1216 = vst.msk [vmem:[#allocation5 + $0x218] sm:$0xff] %vm457_vm3, %v1201_v36  ;;  %v1188_v43 = vsel %vm440_vm2, %v1124_v1, %v1084_v22  ;;  %v1126_v33 = vadd.f32 %v1118_v24, %v1102_v54  ;;  %v1151_v46 = vmul.f32 %v1143_v55, %v3496_v27  ;;  %v803_v36 = vld [vmem:[#allocation2 + $0xb8] sm:$0xff]  ;;  %v821_v42 = vmul.f32 %v805_v53, %v1917_v3 }
 0x1a5   :  { %1205 = vst.msk [vmem:[#allocation5 + $0x80] sm:$0xff] %vm457_vm3, %v1188_v43  ;;  %1459 = vrot.lane.b32.xlu2 %v2828_v31, %s1897_s0  ;;  %1451 = vrot.lane.b32.xlu1 %v2775_v51, %s1897_s0  ;;  %v818_v31 = vmul.f32 %v802_v16, %v1917_v3  ;;  %v1127_v48 = vadd.f32 %v1119_v26, %v1103_v29 }
 0x1a6   :  { %1455 = vrot.lane.b32.xlu0 %v2673_v7, %s1897_s0  ;;  %v1069_v7 = vsel %vm313_vm0, %v925_v18, %v797_v38  ;;  %v819_v43 = vmul.f32 %v803_v36, %v1917_v3 }
 0x1a7   :  { %v1033_v56 = vpop.permute.xlu2 %1032  ;;  %v1007_v8 = vpop.permute.xlu1 %1006  ;;  %v930_v45 = vadd.f32 %v2791_v63, %v818_v31  ;;  %v1072_v63 = vsel %vm313_vm0, %v928_v39, %v800_v52  ;;  %v933_v31 = vadd.f32 %v2821_v5, %v821_v42  ;;  %v947_v52 = vmul.f32 %v803_v36, %v2011_v44  ;;  %v1114_v5 = vld [vmem:[#allocation2 + $0x2ac] sm:$0xf] }
 0x1a8   :  { %v1066_v51 = vadd.f32 %v1033_v56, %v954_v62  ;;  %v1053_v40 = vadd.f32 %v1007_v8, %v941_v17  ;;  %v1011_v4 = vpop.permute.xlu0 %1010  ;;  %v1135_v62 = vmul.f32 %v803_v36, %v3499_v59  ;;  %v1167_v56 = vrot.slane %v1151_v46, 4  ;;  %v1146_v39 = vld [vmem:[#allocation2 + $0x2ec] sm:$0xf] }
 0x1a9   :  { %v1055_v9 = vadd.f32 %v1011_v4, %v943_v41  ;;  %v1074_v18 = vsel %vm313_vm0, %v930_v45, %v802_v16  ;;  %v931_v16 = vadd.f32 %v2878_v23, %v819_v43  ;;  %v949_v4 = vmul.f32 %v805_v53, %v2011_v44  ;;  %v1147_v45 = vld [vmem:[#allocation2 + $0x2fc] sm:$0xf] }
 0x1aa   :  { %v1098_v28 = vsel %vm330_vm1, %v1082_v35, %v1066_v51  ;;  %v1085_v60 = vsel %vm330_vm1, %v1069_v7, %v1053_v40  ;;  %v1183_v40 = vadd.f32 %v1167_v56, %v1135_v62  ;;  %v1122_v55 = vmul.f32 %v1114_v5, %v3497_v32 }
 0x1ab   :  { %v1195_v10 = vsel %vm440_vm2, %v1131_v47, %v1098_v28  ;;  %v1196_v1 = vsel %vm440_vm2, %v1085_v60, %v1180_v58  ;;  %v1087_v38 = vsel %vm330_vm1, %v1071_v6, %v1055_v9  ;;  %v1136_v58 = vmul.f32 %v805_v53, %v3499_v59  ;;  %v1113_v9 = vld [vmem:[#allocation2 + $0x29c] sm:$0xf] }
 0x1ac   :  { %1219 = vst.msk [vmem:[#allocation5 + $0x230] sm:$0xff] %vm457_vm3, %v1195_v10  ;;  %v1197_v20 = vsel %vm440_vm2, %v1087_v38, %v1181_v30  ;;  %v1075_v23 = vsel %vm313_vm0, %v931_v16, %v803_v36  ;;  %v822_v6 = vmul.f32 %v806_v57, %v1917_v3  ;;  %v1077_v28 = vsel %vm313_vm0, %v933_v31, %v805_v53 }
 0x1ad   :  { %1206 = vst.msk [vmem:[#allocation5 + $0x88] sm:$0xff] %vm457_vm3, %v1196_v1  ;;  %1457 = vrot.lane.b32.xlu1 %v2805_v19, %s1897_s0  ;;  %v1152_v19 = vmul.f32 %v1144_v50, %v3496_v27  ;;  %v824_v60 = vmul.f32 %v808_v14, %v1917_v3  ;;  %v1105_v1 = vmul.f32 %v806_v57, %v3496_v27 }
 0x1ae   :  { %1208 = vst.msk [vmem:[#allocation5 + $0x98] sm:$0xff] %vm457_vm3, %v1197_v20  ;;  %v1121_v29 = vmul.f32 %v1113_v9, %v3497_v32  ;;  %v1106_v20 = vmul.f32 %v808_v14, %v3496_v27  ;;  %v934_v50 = vadd.f32 %v2893_v13, %v822_v6  ;;  %v952_v36 = vmul.f32 %v808_v14, %v2011_v44 }
 0x1af   :  { %v2981_v15 = vpop.permute.xlu2 %1303  ;;  %v1013_v37 = vpop.permute.xlu1 %1012  ;;  %v1168_v41 = vrot.slane %v1152_v19, 4  ;;  %v1155_v13 = vmul.f32 %v1147_v45, %v3496_v27 }
 0x1b0   :  { %v1056_v22 = vadd.f32 %v1013_v37, %v944_v61  ;;  %v1017_v2 = vpop.permute.xlu0 %1016  ;;  %v936_v61 = vadd.f32 %v2846_v21, %v824_v60  ;;  %v1130_v19 = vadd.f32 %v1122_v55, %v1106_v20  ;;  %v1078_v43 = vsel %vm313_vm0, %v934_v50, %v806_v57  ;;  %v1221_v60 = vld [vmem:[#allocation2 + $0xc0] sm:$0xff]  ;;  %v1224_v55 = vld [vmem:[#allocation2 + $0xd8] sm:$0xff] }
 0x1b1   :  { %v1058_v12 = vadd.f32 %v1017_v2, %v946_v0  ;;  %v1184_v11 = vadd.f32 %v1168_v41, %v1136_v58  ;;  %v1129_v0 = vadd.f32 %v1121_v29, %v1105_v1  ;;  %v1171_v41 = vrot.slane %v1155_v13, 4 }
 0x1b2   :  { %v1088_v34 = vsel %vm330_vm1, %v1072_v63, %v1056_v22  ;;  %v1154_v22 = vmul.f32 %v1146_v39, %v3496_v27  ;;  %v811_v63 = vld [vmem:[#allocation2 + $0x238] sm:$0xff]  ;;  %v1237_v1 = vmul.f32 %v1221_v60, %v1917_v3  ;;  %v1240_v45 = vmul.f32 %v1224_v55, %v1917_v3 }
 0x1b3   :  { %v1190_v17 = vsel %vm440_vm2, %v1126_v33, %v1088_v34  ;;  %v1090_v47 = vsel %vm330_vm1, %v1074_v18, %v1058_v12  ;;  %v950_v33 = vmul.f32 %v806_v57, %v2011_v44  ;;  %v1080_v18 = vsel %vm313_vm0, %v936_v61, %v808_v14 }
 0x1b4   :  { %1209 = vst.msk [vmem:[#allocation5 + $0xa0] sm:$0xff] %vm457_vm3, %v1190_v17  ;;  %v1191_v8 = vsel %vm440_vm2, %v1127_v48, %v1090_v47  ;;  %v809_v48 = vld [vmem:[#allocation2 + $0x228] sm:$0xff]  ;;  %v827_v42 = vmul.f32 %v811_v63, %v1917_v3  ;;  %v1170_v56 = vrot.slane %v1154_v22, 4  ;;  %v1139_v58 = vmul.f32 %v811_v63, %v3499_v59 }
 0x1b5   :  { %1211 = vst.msk [vmem:[#allocation5 + $0xb0] sm:$0xff] %vm457_vm3, %v1191_v8  ;;  %v825_v21 = vmul.f32 %v809_v48, %v1917_v3  ;;  %v1138_v62 = vmul.f32 %v809_v48, %v3499_v59  ;;  %v955_v57 = vmul.f32 %v811_v63, %v2011_v44 }
 0x1b6   :  { %v939_v31 = vadd.f32 %v2862_v49, %v827_v42  ;;  %v1230_v42 = vld [vmem:[#allocation2 + $0x248] sm:$0xff] }
 0x1b7   :  { %v3001_v51 = vpop.permute.xlu2 %1309  ;;  %v1019_v30 = vpop.permute.xlu1 %1018  ;;  %v937_v16 = vadd.f32 %v2910_v25, %v825_v21 }
 0x1b8   :  { %v1059_v7 = vadd.f32 %v1019_v30, %v947_v52  ;;  %v1023_v35 = vpop.permute.xlu0 %1022  ;;  %v953_v52 = vmul.f32 %v809_v48, %v2011_v44  ;;  %v1186_v30 = vadd.f32 %v1170_v56, %v1138_v62  ;;  %v1083_v25 = vsel %vm313_vm0, %v939_v31, %v811_v63  ;;  %v1233_v31 = vld [vmem:[#allocation2 + $0x260] sm:$0xff] }
 0x1b9   :  { %v1061_v54 = vadd.f32 %v1023_v35, %v949_v4  ;;  %v1081_v9 = vsel %vm313_vm0, %v937_v16, %v809_v48  ;;  %v1227_v48 = vld [vmem:[#allocation2 + $0xf0] sm:$0xff] }
 0x1ba   :  { %v1091_v10 = vsel %vm330_vm1, %v1075_v23, %v1059_v7 }
 0x1bb   :  { %v1199_v38 = vsel %vm440_vm2, %v1091_v10, %v1183_v40  ;;  %v1093_v24 = vsel %vm330_vm1, %v1077_v28, %v1061_v54 }
 0x1bc   :  { %1212 = vst.msk [vmem:[#allocation5 + $0xb8] sm:$0xff] %vm457_vm3, %v1199_v38  ;;  %v1200_v26 = vsel %vm440_vm2, %v1093_v24, %v1184_v11  ;;  %v1187_v11 = vadd.f32 %v1171_v41, %v1139_v58  ;;  %v1365_v24 = vmul.f32 %v1221_v60, %v2011_v44  ;;  %v1374_v58 = vmul.f32 %v1230_v42, %v2011_v44 }
 0x1bd   :  { %1214 = vst.msk [vmem:[#allocation5 + $0x208] sm:$0xff] %vm457_vm3, %v1200_v26 }
 0x1bf   :  { %v3021_v37 = vpop.permute.xlu2 %1315  ;;  %v1025_v46 = vpop.permute.xlu1 %1024 }
 0x1c0   :  { %v1062_v2 = vadd.f32 %v1025_v46, %v950_v33  ;;  %v1029_v53 = vpop.permute.xlu0 %1028 }
 0x1c1   :  { %v1064_v12 = vadd.f32 %v1029_v53, %v952_v36  ;;  %v1243_v53 = vmul.f32 %v1227_v48, %v1917_v3 }
 0x1c2   :  { %v1094_v34 = vsel %vm330_vm1, %v1078_v43, %v1062_v2  ;;  %v1371_v43 = vmul.f32 %v1227_v48, %v2011_v44 }
 0x1c3   :  { %v1193_v17 = vsel %vm440_vm2, %v1129_v0, %v1094_v34  ;;  %v1096_v47 = vsel %vm330_vm1, %v1080_v18, %v1064_v12  ;;  %v1368_v0 = vmul.f32 %v1224_v55, %v2011_v44 }
 0x1c4   :  { %1215 = vst.msk [vmem:[#allocation5 + $0x210] sm:$0xff] %vm457_vm3, %v1193_v17  ;;  %v1194_v8 = vsel %vm440_vm2, %v1130_v19, %v1096_v47  ;;  %v1246_v17 = vmul.f32 %v1230_v42, %v1917_v3 }
 0x1c5   :  { %1217 = vst.msk [vmem:[#allocation5 + $0x220] sm:$0xff] %vm457_vm3, %v1194_v8 }
 0x1c7   :  { %v3041_v40 = vpop.permute.xlu2 %1321  ;;  %v1031_v4 = vpop.permute.xlu1 %1030 }
 0x1c8   :  { %v1065_v7 = vadd.f32 %v1031_v4, %v953_v52  ;;  %v1035_v35 = vpop.permute.xlu0 %1034 }
 0x1c9   :  { %v1067_v14 = vadd.f32 %v1035_v35, %v955_v57  ;;  %v1249_v57 = vmul.f32 %v1233_v31, %v1917_v3 }
 0x1ca   :  { %v1097_v23 = vsel %vm330_vm1, %v1081_v9, %v1065_v7 }
 0x1cb   :  { %v1202_v49 = vsel %vm440_vm2, %v1097_v23, %v1186_v30  ;;  %v1099_v6 = vsel %vm330_vm1, %v1083_v25, %v1067_v14  ;;  %v1222_v30 = vld [vmem:[#allocation2 + $0xc8] sm:$0xff]  ;;  %v1377_v14 = vmul.f32 %v1233_v31, %v2011_v44 }
 0x1cc   :  { %1218 = vst.msk [vmem:[#allocation5 + $0x228] sm:$0xff] %vm457_vm3, %v1202_v49  ;;  %v1203_v54 = vsel %vm440_vm2, %v1099_v6, %v1187_v11  ;;  %v1238_v7 = vmul.f32 %v1222_v30, %v1917_v3  ;;  %v1366_v49 = vmul.f32 %v1222_v30, %v2011_v44  ;;  %v1223_v6 = vld [vmem:[#allocation2 + $0xd0] sm:$0xff] }
 0x1cd   :  { %1220 = vst.msk [vmem:[#allocation5 + $0x238] sm:$0xff] %vm457_vm3, %v1203_v54 }
 0x1ce   :  { %v1350_v9 = vadd.f32 %v2981_v15, %v1238_v7 }
 0x1cf   :  { %v3052_v5 = vpop.permute.xlu2 %1327  ;;  %v1302_v28 = vpop.permute.xlu1 %1301 }
 0x1d0   :  { %v3054_v10 = vpop.permute.xlu0 %1305  ;;  %v1349_v38 = vadd.f32 %v1302_v28, %v1237_v1  ;;  %v1236_v28 = vld [vmem:[#allocation2 + $0x278] sm:$0xff]  ;;  %v1225_v1 = vld [vmem:[#allocation2 + $0xe0] sm:$0xff]  ;;  %v1494_v15 = vsel %vm313_vm0, %v1350_v9, %v1222_v30 }
 0x1d2   :  { %v1493_v50 = vsel %vm313_vm0, %v1349_v38, %v1221_v60  ;;  %v1239_v38 = vmul.f32 %v1223_v6, %v1917_v3 }
 0x1d7   :  { %v1430_v29 = vpop.permute.xlu2 %1429  ;;  %v1308_v20 = vpop.permute.xlu1 %1307 }
 0x1d8   :  { %v1477_v26 = vadd.f32 %v1430_v29, %v1365_v24  ;;  %v3058_v39 = vpop.permute.xlu0 %1311  ;;  %v1352_v33 = vadd.f32 %v1308_v20, %v1240_v45  ;;  %v1252_v29 = vmul.f32 %v1236_v28, %v1917_v3  ;;  %v1228_v45 = vld [vmem:[#allocation2 + $0xf8] sm:$0xff] }
 0x1da   :  { %v1509_v61 = vsel %vm330_vm1, %v1493_v50, %v1477_v26  ;;  %v1496_v19 = vsel %vm313_vm0, %v1352_v33, %v1224_v55  ;;  %v1241_v26 = vmul.f32 %v1225_v1, %v1917_v3 }
 0x1db   :  { %1526 = vst.msk [vmem:[#allocation5 + $0xc0] sm:$0xff] %vm457_vm3, %v1509_v61  ;;  %v1351_v61 = vadd.f32 %v3054_v10, %v1239_v38  ;;  %v1232_v10 = vld [vmem:[#allocation2 + $0x258] sm:$0xff] }
 0x1df   :  { %v1436_v46 = vpop.permute.xlu2 %1435  ;;  %v1314_v36 = vpop.permute.xlu1 %1313 }
 0x1e0   :  { %v1480_v22 = vadd.f32 %v1436_v46, %v1368_v0  ;;  %v3065_v2 = vpop.permute.xlu0 %1317  ;;  %v1355_v63 = vadd.f32 %v1314_v36, %v1243_v53  ;;  %v1353_v0 = vadd.f32 %v3001_v51, %v1241_v26  ;;  %v1244_v46 = vmul.f32 %v1228_v45, %v1917_v3  ;;  %v1231_v36 = vld [vmem:[#allocation2 + $0x250] sm:$0xff]  ;;  %v3164_v26 = vld [vmem:[#allocation2 + $0x138] sm:$0xff] }
 0x1e1   :  { %v1367_v53 = vmul.f32 %v1223_v6, %v2011_v44  ;;  %v1369_v51 = vmul.f32 %v1225_v1, %v2011_v44  ;;  %3500 = vst [vmem:[#allocation8_spill] sm:$0xff] %v3164_v26 }
 0x1e2   :  { %v1512_v13 = vsel %vm330_vm1, %v1496_v19, %v1480_v22  ;;  %v1499_v62 = vsel %vm313_vm0, %v1355_v63, %v1227_v48  ;;  %v1234_v22 = vld [vmem:[#allocation2 + $0x268] sm:$0xff]  ;;  %v1380_v19 = vmul.f32 %v1236_v28, %v2011_v44 }
 0x1e3   :  { %1529 = vst.msk [vmem:[#allocation5 + $0xd8] sm:$0xff] %vm457_vm3, %v1512_v13  ;;  %v1226_v48 = vld [vmem:[#allocation2 + $0xe8] sm:$0xff]  ;;  %v1247_v13 = vmul.f32 %v1231_v36, %v1917_v3  ;;  %v1250_v63 = vmul.f32 %v1234_v22, %v1917_v3 }
 0x1e5   :  { %v1362_v7 = vadd.f32 %v3052_v5, %v1250_v63  ;;  %v1370_v5 = vmul.f32 %v1226_v48, %v2011_v44  ;;  %v3187_v63 = vld [vmem:[#allocation2 + $0x2b0] sm:$0xff] }
 0x1e6   :  { %3506 = vst [vmem:[#allocation15_spill] sm:$0xff] %v3187_v63 }
 0x1e7   :  { %v1442_v21 = vpop.permute.xlu2 %1441  ;;  %v1320_v12 = vpop.permute.xlu1 %1319 }
 0x1e8   :  { %v1483_v18 = vadd.f32 %v1442_v21, %v1371_v43  ;;  %v3072_v34 = vpop.permute.xlu0 %1323  ;;  %v1358_v56 = vadd.f32 %v1320_v12, %v1246_v17  ;;  %v1242_v43 = vmul.f32 %v1226_v48, %v1917_v3  ;;  %v1229_v21 = vld [vmem:[#allocation2 + $0x240] sm:$0xff] }
 0x1ea   :  { %v1515_v47 = vsel %vm330_vm1, %v1499_v62, %v1483_v18  ;;  %v1502_v4 = vsel %vm313_vm0, %v1358_v56, %v1230_v42  ;;  %v1245_v42 = vmul.f32 %v1229_v21, %v1917_v3  ;;  %v1248_v62 = vmul.f32 %v1232_v10, %v1917_v3 }
 0x1eb   :  { %1532 = vst.msk [vmem:[#allocation5 + $0xf0] sm:$0xff] %vm457_vm3, %v1515_v47 }
 0x1ef   :  { %v1448_v8 = vpop.permute.xlu2 %1447  ;;  %v1326_v41 = vpop.permute.xlu1 %1325 }
 0x1f0   :  { %v1486_v16 = vadd.f32 %v1448_v8, %v1374_v58  ;;  %v3079_v52 = vpop.permute.xlu0 %1329  ;;  %v1361_v35 = vadd.f32 %v1326_v41, %v1249_v57  ;;  %v1495_v58 = vsel %vm313_vm0, %v1351_v61, %v1223_v6  ;;  %v1359_v57 = vadd.f32 %v3041_v40, %v1247_v13  ;;  %v3127_v40 = vld [vmem:[#allocation2 + $0x100] sm:$0xff]  ;;  %v3185_v13 = vld [vmem:[#allocation2 + $0x2a8] sm:$0xff] }
 0x1f1   :  { %v3145_v6 = vmul.f32 %v1232_v10, %v2011_v44  ;;  %3505 = vst [vmem:[#allocation14_spill] sm:$0xff] %v3185_v13 }
 0x1f2   :  { %v1518_v11 = vsel %vm330_vm1, %v1502_v4, %v1486_v16  ;;  %v1505_v24 = vsel %vm313_vm0, %v1361_v35, %v1233_v31  ;;  %v1497_v16 = vsel %vm313_vm0, %v1353_v0, %v1225_v1  ;;  %v1356_v31 = vadd.f32 %v3021_v37, %v1244_v46  ;;  %v3118_v35 = vld [vmem:[#allocation2 + $0x270] sm:$0xff] }
 0x1f3   :  { %1535 = vst.msk [vmem:[#allocation5 + $0x248] sm:$0xff] %vm457_vm3, %v1518_v11  ;;  %v1354_v11 = vadd.f32 %v3058_v39, %v1242_v43  ;;  %v1360_v37 = vadd.f32 %v3072_v34, %v1248_v62  ;;  %v1372_v39 = vmul.f32 %v1228_v45, %v2011_v44  ;;  %v3139_v34 = vmul.f32 %v1229_v21, %v2011_v44  ;;  %v3154_v1 = vld [vmem:[#allocation2 + $0x130] sm:$0xff] }
 0x1f4   :  { %v1500_v38 = vsel %vm313_vm0, %v1356_v31, %v1228_v45  ;;  %v1558_v43 = vmul.f32 %v3127_v40, %v3496_v27  ;;  %v1599_v31 = vld [vmem:[#allocation2 + $0x90] sm:$0xf] }
 0x1f5   :  { %v3174_v45 = vsel %vm313_vm0, %v1360_v37, %v1232_v10  ;;  %v3236_v37 = vmul.f32 %v3187_v63, %v3496_v27 }
 0x1f7   :  { %v1454_v25 = vpop.permute.xlu2 %1453  ;;  %v1332_v23 = vpop.permute.xlu1 %1331 }
 0x1f8   :  { %v1489_v54 = vadd.f32 %v1454_v25, %v1377_v14  ;;  %v1432_v60 = vpop.permute.xlu0 %1431  ;;  %v1364_v33 = vadd.f32 %v1332_v23, %v1252_v29  ;;  %v1357_v14 = vadd.f32 %v3065_v2, %v1245_v42  ;;  %v1251_v25 = vmul.f32 %v3118_v35, %v1917_v3  ;;  %v3132_v23 = vld [vmem:[#allocation2 + $0x108] sm:$0xff]  ;;  %v3136_v2 = vld [vmem:[#allocation2 + $0x118] sm:$0xff]  ;;  %v1569_v42 = vld [vmem:[#allocation2 + $0x30] sm:$0xf] }
 0x1f9   :  { %v1478_v20 = vadd.f32 %v1432_v60, %v1366_v49  ;;  %v3134_v49 = vld [vmem:[#allocation2 + $0x110] sm:$0xff]  ;;  %v3142_v3 = vmul.f32 %v1231_v36, %v2011_v44  ;;  %v3152_v60 = vld [vmem:[#allocation2 + $0x128] sm:$0xff]  ;;  %v3161_v29 = vsel %vm313_vm0, %v1362_v7, %v1234_v22  ;;  %v1591_v62 = vmul.f32 %v3136_v2, %v3499_v59 }
 0x1fa   :  { %v1521_v55 = vsel %vm330_vm1, %v1505_v24, %v1489_v54  ;;  %v1508_v8 = vsel %vm313_vm0, %v1364_v33, %v1236_v28  ;;  %v3148_v54 = vmul.f32 %v1234_v22, %v2011_v44  ;;  %v3150_v28 = vld [vmem:[#allocation2 + $0x120] sm:$0xff]  ;;  %v3158_v24 = vsel %vm313_vm0, %v1359_v57, %v1231_v36  ;;  %v3179_v36 = vld [vmem:[#allocation2 + $0x290] sm:$0xff]  ;;  %v3181_v22 = vld [vmem:[#allocation2 + $0x298] sm:$0xff] }
 0x1fb   :  { %1538 = vst.msk [vmem:[#allocation5 + $0x260] sm:$0xff] %vm457_vm3, %v1521_v55  ;;  %v1510_v50 = vsel %vm330_vm1, %v1494_v15, %v1478_v20  ;;  %v1498_v20 = vsel %vm313_vm0, %v1354_v11, %v1226_v48  ;;  %v3166_v55 = vld [vmem:[#allocation2 + $0x280] sm:$0xff]  ;;  %v3171_v61 = vsel %vm313_vm0, %v1357_v14, %v1229_v21  ;;  %v3177_v33 = vadd.f32 %v3079_v52, %v1251_v25 }
 0x1fc   :  { %1527 = vst.msk [vmem:[#allocation5 + $0xc8] sm:$0xff] %vm457_vm3, %v1510_v50  ;;  %v3168_v50 = vld [vmem:[#allocation2 + $0x288] sm:$0xff]  ;;  %v1566_v48 = vld [vmem:[#allocation2] sm:$0xf]  ;;  %v1559_v52 = vmul.f32 %v3134_v49, %v3496_v27  ;;  %v1590_v21 = vmul.f32 %v3132_v23, %v3499_v59  ;;  %v3222_v57 = vmul.f32 %v3164_v26, %v3499_v59  ;;  %v3230_v11 = vmul.f32 %v3181_v22, %v3499_v59 }
 0x1fd   :  { %3501 = vst [vmem:[#allocation9_spill] sm:$0xff] %v3168_v50  ;;  %v3226_v7 = vmul.f32 %v3168_v50, %v3499_v59  ;;  %v1605_v50 = vld [vmem:[#allocation2 + $0x230] sm:$0xf]  ;;  %v1572_v26 = vld [vmem:[#allocation2 + $0x1a0] sm:$0xf] }
 0x1fe   :  { %3502 = vst [vmem:[#allocation11_spill] sm:$0xff] %v3179_v36 }
 0x1ff   :  { %v1460_v12 = vpop.permute.xlu2 %1459  ;;  %v1434_v18 = vpop.permute.xlu1 %1433  ;;  %3503 = vst [vmem:[#allocation12_spill] sm:$0xff] %v3181_v22  ;;  %v1604_v22 = vld [vmem:[#allocation2 + $0x220] sm:$0xf] }
 0x200   :  { %v1492_v17 = vadd.f32 %v1460_v12, %v1380_v19  ;;  %v1479_v47 = vadd.f32 %v1434_v18, %v1367_v53  ;;  %v1438_v56 = vpop.permute.xlu0 %1437  ;;  %v3183_v53 = vld [vmem:[#allocation2 + $0x2a0] sm:$0xff]  ;;  %v1560_v12 = vmul.f32 %v3150_v28, %v3496_v27  ;;  %v1567_v18 = vld [vmem:[#allocation2 + $0x10] sm:$0xf] }
 0x201   :  { %v1481_v41 = vadd.f32 %v1438_v56, %v1369_v51  ;;  %3504 = vst [vmem:[#allocation13_spill] sm:$0xff] %v3183_v53  ;;  %v1568_v51 = vld [vmem:[#allocation2 + $0x20] sm:$0xf]  ;;  %v3206_v56 = vld [vmem:[#allocation2 + $0x2b8] sm:$0xff]  ;;  %v1564_v14 = vmul.f32 %v3183_v53, %v3496_v27  ;;  %v1575_v25 = vmul.f32 %v1567_v18, %v3497_v32  ;;  %v1577_v18 = vmul.f32 %v1569_v42, %v3497_v32 }
 0x202   :  { %v1524_v30 = vsel %vm330_vm1, %v1508_v8, %v1492_v17  ;;  %v1511_v4 = vsel %vm330_vm1, %v1495_v58, %v1479_v47  ;;  %v3202_v17 = vmul.f32 %v3152_v60, %v3499_v59  ;;  %3507 = vst [vmem:[#allocation16_spill] sm:$0xff] %v3206_v56  ;;  %v1561_v58 = vmul.f32 %v3154_v1, %v3496_v27 }
 0x203   :  { %1541 = vst.msk [vmem:[#allocation5 + $0x278] sm:$0xff] %vm457_vm3, %v1524_v30  ;;  %v1513_v9 = vsel %vm330_vm1, %v1497_v16, %v1481_v41  ;;  %v3212_v8 = vmul.f32 %v3166_v55, %v3496_v27  ;;  %v1574_v41 = vmul.f32 %v1566_v48, %v3497_v32  ;;  %v1598_v16 = vld [vmem:[#allocation2 + $0x80] sm:$0xf]  ;;  %v3218_v30 = vmul.f32 %v3179_v36, %v3496_v27  ;;  %v1573_v36 = vld [vmem:[#allocation2 + $0x1b0] sm:$0xf] }
 0x204   :  { %1528 = vst.msk [vmem:[#allocation5 + $0xd0] sm:$0xff] %vm457_vm3, %v1511_v4  ;;  %v1570_v4 = vld [vmem:[#allocation2 + $0x180] sm:$0xf] }
 0x205   :  { %1530 = vst.msk [vmem:[#allocation5 + $0xe0] sm:$0xff] %vm457_vm3, %v1513_v9  ;;  %v1600_v9 = vld [vmem:[#allocation2 + $0xa0] sm:$0xf] }
 0x206   :  { %v1608_v48 = vmul.f32 %v1600_v9, %v3496_v27  ;;  %v1571_v9 = vld [vmem:[#allocation2 + $0x190] sm:$0xf] }
 0x207   :  { %v1440_v15 = vpop.permute.xlu1 %1439 }
 0x208   :  { %v1482_v0 = vadd.f32 %v1440_v15, %v1370_v5  ;;  %v1444_v46 = vpop.permute.xlu0 %1443  ;;  %v3241_v5 = vmul.f32 %v3185_v13, %v3499_v59  ;;  %v1603_v15 = vld [vmem:[#allocation2 + $0x210] sm:$0xf]  ;;  %v1582_v13 = vadd.f32 %v1574_v41, %v1558_v43  ;;  %v1613_v41 = vmul.f32 %v1605_v50, %v3496_v27 }
 0x209   :  { %v1484_v19 = vadd.f32 %v1444_v46, %v1372_v39  ;;  %v1601_v39 = vld [vmem:[#allocation2 + $0xb0] sm:$0xf]  ;;  %v1607_v46 = vmul.f32 %v1599_v31, %v3496_v27 }
 0x20a   :  { %v1514_v10 = vsel %vm330_vm1, %v1498_v20, %v1482_v0  ;;  %v1602_v20 = vld [vmem:[#allocation2 + $0x200] sm:$0xf]  ;;  %v1606_v0 = vmul.f32 %v1598_v16, %v3496_v27  ;;  %v1609_v63 = vmul.f32 %v1601_v39, %v3496_v27  ;;  %v1624_v39 = vrot.slane %v1608_v48, 4 }
 0x20b   :  { %1531 = vst.msk [vmem:[#allocation5 + $0xe8] sm:$0xff] %vm457_vm3, %v1514_v10  ;;  %v1516_v47 = vsel %vm330_vm1, %v1500_v38, %v1484_v19  ;;  %v3245_v38 = vmul.f32 %v3206_v56, %v3499_v59  ;;  %v1576_v10 = vmul.f32 %v1568_v51, %v3497_v32  ;;  %v1623_v53 = vrot.slane %v1607_v46, 4 }
 0x20c   :  { %1533 = vst.msk [vmem:[#allocation5 + $0xf8] sm:$0xff] %vm457_vm3, %v1516_v47  ;;  %v1578_v47 = vmul.f32 %v1570_v4, %v3497_v32  ;;  %v1622_v16 = vrot.slane %v1606_v0, 4  ;;  %v1583_v51 = vadd.f32 %v1575_v25, %v1559_v52  ;;  %v1610_v42 = vmul.f32 %v1602_v20, %v3496_v27 }
 0x20d   :  { %v1611_v4 = vmul.f32 %v1603_v15, %v3496_v27  ;;  %v1639_v52 = vadd.f32 %v1623_v53, %v1591_v62  ;;  %v1579_v25 = vmul.f32 %v1571_v9, %v3497_v32  ;;  %v1580_v20 = vmul.f32 %v1572_v26, %v3497_v32  ;;  %v3510_v9 = vld [vmem:[#allocation13_spill] sm:$0xff] }
 0x20e   :  { %v1638_v0 = vadd.f32 %v1622_v16, %v1590_v21  ;;  %v1646_v15 = vsel %vm440_vm2, %v1582_v13, %v3127_v40  ;;  %v1629_v53 = vrot.slane %v1613_v41, 4  ;;  %v1640_v62 = vadd.f32 %v1624_v39, %v3202_v17  ;;  %v1703_v16 = vld [vmem:[#allocation2 + $0xc] sm:$0xf]  ;;  %v1706_v39 = vld [vmem:[#allocation2 + $0x3c] sm:$0xf] }
 0x20f   :  { %v1446_v19 = vpop.permute.xlu1 %1445  ;;  %v1627_v50 = vrot.slane %v1611_v4, 4  ;;  %1663 = vst.msk [vmem:[#allocation5 + $0x100] sm:$0xff] %vm457_vm3, %v1646_v15  ;;  %v1586_v26 = vadd.f32 %v1578_v47, %v3212_v8  ;;  %v1655_v40 = vsel %vm440_vm2, %v3136_v2, %v1639_v52  ;;  %v1587_v17 = vadd.f32 %v1579_v25, %v3218_v30  ;;  %v3326_v47 = vld [vmem:[#allocation2 + $0x2d0] sm:$0xff]  ;;  %v3513_v4 = vld [vmem:[#allocation12_spill] sm:$0xff]  ;;  %v1705_v41 = vld [vmem:[#allocation2 + $0x2c] sm:$0xf] }
 0x210   :  { %v1485_v59 = vadd.f32 %v1446_v19, %v3139_v34  ;;  %v1450_v56 = vpop.permute.xlu0 %1449  ;;  %v1612_v34 = vmul.f32 %v1604_v22, %v3496_v27  ;;  %v1626_v22 = vrot.slane %v1610_v42, 4  ;;  %1666 = vst.msk [vmem:[#allocation5 + $0x118] sm:$0xff] %vm457_vm3, %v1655_v40  ;;  %v1507_v19 = vsel %vm313_vm0, %v3177_v33, %v3118_v35  ;;  %v3511_v42 = vld [vmem:[#allocation15_spill] sm:$0xff]  ;;  %v3512_v33 = vld [vmem:[#allocation9_spill] sm:$0xff] }
 0x211   :  { %v1487_v31 = vadd.f32 %v1450_v56, %v3142_v3  ;;  %v1584_v56 = vadd.f32 %v1576_v10, %v1560_v12  ;;  %v1585_v12 = vadd.f32 %v1577_v18, %v1561_v58  ;;  %v1588_v58 = vadd.f32 %v1580_v20, %v1564_v14  ;;  %v3508_v10 = vld [vmem:[#allocation11_spill] sm:$0xff]  ;;  %v3509_v18 = vld [vmem:[#allocation8_spill] sm:$0xff]  ;;  %v3348_v25 = vld [vmem:[#allocation2 + $0x148] sm:$0xff] }
 0x212   :  { %v1517_v43 = vsel %vm330_vm1, %v3171_v61, %v1485_v59  ;;  %v1581_v59 = vmul.f32 %v1573_v36, %v3497_v32  ;;  %v1625_v61 = vrot.slane %v1609_v63, 4  ;;  %v1628_v21 = vrot.slane %v1612_v34, 4  ;;  %v3339_v34 = vld [vmem:[#allocation2 + $0x2e0] sm:$0xff]  ;;  %v3355_v15 = vld [vmem:[#allocation2 + $0x158] sm:$0xff] }
 0x213   :  { %1534 = vst.msk [vmem:[#allocation5 + $0x240] sm:$0xff] %vm457_vm3, %v1517_v43  ;;  %v1519_v3 = vsel %vm330_vm1, %v3158_v24, %v1487_v31  ;;  %v1647_v24 = vsel %vm440_vm2, %v1583_v51, %v3134_v49  ;;  %v1648_v36 = vsel %vm440_vm2, %v1584_v56, %v3150_v28  ;;  %v1654_v63 = vsel %vm440_vm2, %v3132_v23, %v1638_v0  ;;  %v1704_v31 = vld [vmem:[#allocation2 + $0x1c] sm:$0xf]  ;;  %v3515_v0 = vld [vmem:[#allocation16_spill] sm:$0xff] }
 0x214   :  { %1536 = vst.msk [vmem:[#allocation5 + $0x250] sm:$0xff] %vm457_vm3, %v1519_v3  ;;  %v1641_v48 = vadd.f32 %v1625_v61, %v3222_v57  ;;  %v1589_v8 = vadd.f32 %v1581_v59, %v3236_v37  ;;  %v1642_v23 = vadd.f32 %v1626_v22, %v3226_v7  ;;  %v1643_v2 = vadd.f32 %v1627_v50, %v3230_v11  ;;  %v3301_v37 = vld [vmem:[#allocation2 + $0x150] sm:$0xff]  ;;  %v1707_v61 = vld [vmem:[#allocation2 + $0x18c] sm:$0xf] }
 0x215   :  { %1665 = vst.msk [vmem:[#allocation5 + $0x110] sm:$0xff] %vm457_vm3, %v1647_v24  ;;  %v1644_v30 = vadd.f32 %v1628_v21, %v3241_v5  ;;  %v1645_v14 = vadd.f32 %v1629_v53, %v3245_v38  ;;  %v1656_v57 = vsel %vm440_vm2, %v3152_v60, %v1640_v62  ;;  %v1649_v11 = vsel %vm440_vm2, %v1585_v12, %v3154_v1  ;;  %v3310_v5 = vld [vmem:[#allocation2 + $0x160] sm:$0xff]  ;;  %v3312_v60 = vld [vmem:[#allocation2 + $0x170] sm:$0xff]  ;;  %v1735_v22 = vld [vmem:[#allocation2 + $0x8c] sm:$0xf] }
 0x216   :  { %1664 = vst.msk [vmem:[#allocation5 + $0x108] sm:$0xff] %vm457_vm3, %v1654_v63  ;;  %v3314_v38 = vld [vmem:[#allocation2 + $0x2c0] sm:$0xff]  ;;  %v1657_v1 = vsel %vm440_vm2, %v3509_v18, %v1641_v48  ;;  %v1652_v51 = vsel %vm440_vm2, %v1588_v58, %v3510_v9  ;;  %v1659_v43 = vsel %vm440_vm2, %v3513_v4, %v1643_v2  ;;  %v3514_v3 = vld [vmem:[#allocation14_spill] sm:$0xff]  ;;  %v1696_v59 = vmul.f32 %v3301_v37, %v3496_v27  ;;  %v1736_v62 = vld [vmem:[#allocation2 + $0x9c] sm:$0xf] }
 0x217   :  { %v1452_v46 = vpop.permute.xlu1 %1451  ;;  %1667 = vst.msk [vmem:[#allocation5 + $0x120] sm:$0xff] %vm457_vm3, %v1648_v36  ;;  %v1660_v56 = vsel %vm440_vm2, %v3514_v3, %v1644_v30  ;;  %v3345_v52 = vsel %vm440_vm2, %v3515_v0, %v1645_v14  ;;  %v1697_v24 = vmul.f32 %v3310_v5, %v3496_v27  ;;  %v1698_v12 = vmul.f32 %v3312_v60, %v3496_v27  ;;  %v3370_v36 = vld [vmem:[#allocation2 + $0x168] sm:$0xff]  ;;  %v1740_v14 = vld [vmem:[#allocation2 + $0x21c] sm:$0xf] }
 0x218   :  { %v1488_v49 = vadd.f32 %v1452_v46, %v3145_v6  ;;  %v1456_v13 = vpop.permute.xlu0 %1455  ;;  %1668 = vst.msk [vmem:[#allocation5 + $0x128] sm:$0xff] %vm457_vm3, %v1656_v57  ;;  %v3363_v21 = vmul.f32 %v3314_v38, %v3496_v27  ;;  %v3367_v53 = vmul.f32 %v3326_v47, %v3496_v27  ;;  %v1737_v46 = vld [vmem:[#allocation2 + $0xac] sm:$0xf]  ;;  %v3374_v63 = vmul.f32 %v3339_v34, %v3496_v27  ;;  %v1742_v0 = vld [vmem:[#allocation2 + $0x23c] sm:$0xf] }
 0x219   :  { %v1490_v28 = vadd.f32 %v1456_v13, %v3148_v54  ;;  %v3299_v54 = vld [vmem:[#allocation2 + $0x140] sm:$0xff]  ;;  %1669 = vst.msk [vmem:[#allocation5 + $0x130] sm:$0xff] %vm457_vm3, %v1649_v11  ;;  %v1711_v40 = vmul.f32 %v1703_v16, %v3497_v32  ;;  %v1738_v13 = vld [vmem:[#allocation2 + $0xbc] sm:$0xf]  ;;  %v1713_v58 = vmul.f32 %v1705_v41, %v3497_v32  ;;  %v1714_v48 = vmul.f32 %v1706_v39, %v3497_v32  ;;  %v1741_v16 = vld [vmem:[#allocation2 + $0x22c] sm:$0xf] }
 0x21a   :  { %v1520_v6 = vsel %vm330_vm1, %v3174_v45, %v1488_v49  ;;  %v1379_v45 = vmul.f32 %v3118_v35, %v2011_v44  ;;  %v1651_v44 = vsel %vm440_vm2, %v1587_v17, %v3508_v10  ;;  %v3332_v35 = vsel %vm440_vm2, %v1589_v8, %v3511_v42  ;;  %1670 = vst.msk [vmem:[#allocation5 + $0x138] sm:$0xff] %vm457_vm3, %v1657_v1  ;;  %v1739_v17 = vld [vmem:[#allocation2 + $0x20c] sm:$0xf]  ;;  %v3516_v8 = vld [vmem:[#allocation10_spill] sm:$0xff] }
 0x21b   :  { %1537 = vst.msk [vmem:[#allocation5 + $0x258] sm:$0xff] %vm457_vm3, %v1520_v6  ;;  %v1522_v7 = vsel %vm330_vm1, %v3161_v29, %v1490_v28  ;;  %v1650_v29 = vsel %vm440_vm2, %v1586_v26, %v3166_v55  ;;  %v1658_v55 = vsel %vm440_vm2, %v3512_v33, %v1642_v23  ;;  %v1695_v20 = vmul.f32 %v3299_v54, %v3496_v27  ;;  %v3386_v6 = vld [vmem:[#allocation2 + $0x178] sm:$0xff]  ;;  %v1709_v42 = vld [vmem:[#allocation2 + $0x1ac] sm:$0xf] }
 0x21c   :  { %1539 = vst.msk [vmem:[#allocation5 + $0x268] sm:$0xff] %vm457_vm3, %v1522_v7  ;;  %v1712_v49 = vmul.f32 %v1704_v31, %v3497_v32  ;;  %v1715_v28 = vmul.f32 %v1707_v61, %v3497_v32  ;;  %v1727_v23 = vmul.f32 %v3348_v25, %v3516_v8  ;;  %v1728_v30 = vmul.f32 %v3355_v15, %v3516_v8 }
 0x21d   :  { %1671 = vst.msk [vmem:[#allocation5 + $0x280] sm:$0xff] %vm457_vm3, %v1650_v29  ;;  %v1743_v57 = vmul.f32 %v1735_v22, %v3496_v27  ;;  %v1744_v7 = vmul.f32 %v1736_v62, %v3496_v27  ;;  %v1729_v11 = vmul.f32 %v3370_v36, %v3516_v8  ;;  %v1746_v29 = vmul.f32 %v1738_v13, %v3496_v27 }
 0x21e   :  { %1672 = vst.msk [vmem:[#allocation5 + $0x288] sm:$0xff] %vm457_vm3, %v1658_v55  ;;  %v1747_v10 = vmul.f32 %v1739_v17, %v3496_v27  ;;  %v1719_v18 = vadd.f32 %v1711_v40, %v1695_v20  ;;  %v1720_v1 = vadd.f32 %v1712_v49, %v1696_v59  ;;  %v1730_v33 = vmul.f32 %v3386_v6, %v3516_v8  ;;  %v1710_v40 = vld [vmem:[#allocation2 + $0x1bc] sm:$0xf] }
 0x21f   :  { %v1458_v50 = vpop.permute.xlu1 %1457  ;;  %1673 = vst.msk [vmem:[#allocation5 + $0x290] sm:$0xff] %vm457_vm3, %v1651_v44  ;;  %v3399_v44 = vld [vmem:[#allocation2 + $0x2c8] sm:$0xff]  ;;  %v1759_v31 = vrot.slane %v1743_v57, 4  ;;  %v1760_v9 = vrot.slane %v1744_v7, 4  ;;  %v1748_v55 = vmul.f32 %v1740_v14, %v3496_v27  ;;  %v1762_v41 = vrot.slane %v1746_v29, 4 }
 0x220   :  { %v1491_v26 = vadd.f32 %v1458_v50, %v1379_v45  ;;  %v1708_v45 = vld [vmem:[#allocation2 + $0x19c] sm:$0xf]  ;;  %1674 = vst.msk [vmem:[#allocation5 + $0x298] sm:$0xff] %vm457_vm3, %v1659_v43  ;;  %v1721_v3 = vadd.f32 %v1713_v58, %v1697_v24  ;;  %v1749_v61 = vmul.f32 %v1741_v16, %v3496_v27  ;;  %v1763_v22 = vrot.slane %v1747_v10, 4 }
 0x221   :  { %1675 = vst.msk [vmem:[#allocation5 + $0x2a0] sm:$0xff] %vm457_vm3, %v1652_v51  ;;  %v1690_v43 = vld [vmem:[#allocation2 + $0x2d8] sm:$0xff]  ;;  %v1716_v39 = vmul.f32 %v1708_v45, %v3497_v32  ;;  %v1775_v20 = vadd.f32 %v1759_v31, %v1727_v23  ;;  %v1776_v59 = vadd.f32 %v1760_v9, %v1728_v30  ;;  %v1731_v51 = vmul.f32 %v3399_v44, %v3516_v8 }
 0x222   :  { %v1523_v2 = vsel %vm330_vm1, %v1507_v19, %v1491_v26  ;;  %v1745_v19 = vmul.f32 %v1737_v46, %v3496_v27  ;;  %1676 = vst.msk [vmem:[#allocation5 + $0x2a8] sm:$0xff] %vm457_vm3, %v1660_v56  ;;  %v1692_v56 = vld [vmem:[#allocation2 + $0x2e8] sm:$0xff]  ;;  %v1717_v62 = vmul.f32 %v1709_v42, %v3497_v32  ;;  %v1722_v24 = vadd.f32 %v1714_v48, %v1698_v12  ;;  %v1693_v26 = vld [vmem:[#allocation2 + $0x2f0] sm:$0xff] }
 0x223   :  { %1540 = vst.msk [vmem:[#allocation5 + $0x270] sm:$0xff] %vm457_vm3, %v1523_v2  ;;  %v1783_v46 = vsel %vm440_vm2, %v1719_v18, %v3299_v54  ;;  %v1732_v49 = vmul.f32 %v1690_v43, %v3516_v8  ;;  %v1750_v13 = vmul.f32 %v1742_v0, %v3496_v27  ;;  %v1764_v17 = vrot.slane %v1748_v55, 4 }
 0x224   :  { %v1761_v4 = vrot.slane %v1745_v19, 4  ;;  %1677 = vst.msk [vmem:[#allocation5 + $0x2b0] sm:$0xff] %vm457_vm3, %v3332_v35  ;;  %v1784_v35 = vsel %vm440_vm2, %v1720_v1, %v3301_v37  ;;  %v1778_v58 = vadd.f32 %v1762_v41, %v1730_v33  ;;  %v1723_v23 = vadd.f32 %v1715_v28, %v3363_v21 }
 0x225   :  { %1678 = vst.msk [vmem:[#allocation5 + $0x2b8] sm:$0xff] %vm457_vm3, %v3345_v52  ;;  %v1694_v52 = vld [vmem:[#allocation2 + $0x2f8] sm:$0xff]  ;;  %v1785_v12 = vsel %vm440_vm2, %v1721_v3, %v3310_v5  ;;  %v1791_v54 = vsel %vm440_vm2, %v3348_v25, %v1775_v20  ;;  %v1792_v37 = vsel %vm440_vm2, %v3355_v15, %v1776_v59  ;;  %v1733_v48 = vmul.f32 %v1692_v56, %v3516_v8 }
 0x226   :  { %v1777_v50 = vadd.f32 %v1761_v4, %v1729_v11  ;;  %1800 = vst.msk [vmem:[#allocation5 + $0x140] sm:$0xff] %vm457_vm3, %v1783_v46  ;;  %v1765_v2 = vrot.slane %v1749_v61, 4  ;;  %v1779_v30 = vadd.f32 %v1763_v22, %v1731_v51  ;;  %v1702_v21 = vmul.f32 %v1693_v26, %v3496_v27 }
 0x227   :  { %1802 = vst.msk [vmem:[#allocation5 + $0x150] sm:$0xff] %vm457_vm3, %v1784_v35  ;;  %v1718_v5 = vmul.f32 %v1710_v40, %v3497_v32  ;;  %v1724_v25 = vadd.f32 %v1716_v39, %v3367_v53  ;;  %v1786_v15 = vsel %vm440_vm2, %v1722_v24, %v3312_v60  ;;  %v1734_v28 = vmul.f32 %v1694_v52, %v3516_v8 }
 0x228   :  { %v1793_v14 = vsel %vm440_vm2, %v3370_v36, %v1777_v50  ;;  %1801 = vst.msk [vmem:[#allocation5 + $0x148] sm:$0xff] %vm457_vm3, %v1791_v54  ;;  %v1766_v57 = vrot.slane %v1750_v13, 4  ;;  %v1780_v7 = vadd.f32 %v1764_v17, %v1732_v49  ;;  %v1794_v36 = vsel %vm440_vm2, %v3386_v6, %v1778_v58 }
 0x229   :  { %1803 = vst.msk [vmem:[#allocation5 + $0x158] sm:$0xff] %vm457_vm3, %v1792_v37  ;;  %v1725_v27 = vadd.f32 %v1717_v62, %v3374_v63  ;;  %v1787_v32 = vsel %vm440_vm2, %v1723_v23, %v3314_v38  ;;  %v1781_v53 = vadd.f32 %v1765_v2, %v1733_v48  ;;  %v1795_v60 = vsel %vm440_vm2, %v3399_v44, %v1779_v30 }
 0x22a   :  { %1804 = vst.msk [vmem:[#allocation5 + $0x160] sm:$0xff] %vm457_vm3, %v1785_v12  ;;  %v1726_v8 = vadd.f32 %v1718_v5, %v1702_v21  ;;  %v1788_v45 = vsel %vm440_vm2, %v1724_v25, %v3326_v47  ;;  %v1782_v6 = vadd.f32 %v1766_v57, %v1734_v28  ;;  %v1796_v63 = vsel %vm440_vm2, %v1690_v43, %v1780_v7 }
 0x22b   :  { %1805 = vst.msk [vmem:[#allocation5 + $0x168] sm:$0xff] %vm457_vm3, %v1793_v14  ;;  %v1789_v38 = vsel %vm440_vm2, %v1725_v27, %v3339_v34  ;;  %v1797_v11 = vsel %vm440_vm2, %v1692_v56, %v1781_v53 }
 0x22c   :  { %1806 = vst.msk [vmem:[#allocation5 + $0x170] sm:$0xff] %vm457_vm3, %v1786_v15  ;;  %v1790_v47 = vsel %vm440_vm2, %v1726_v8, %v1693_v26  ;;  %v1798_v19 = vsel %vm440_vm2, %v1694_v52, %v1782_v6 }
 0x22d   :  { %1807 = vst.msk [vmem:[#allocation5 + $0x178] sm:$0xff] %vm457_vm3, %v1794_v36 }
 0x22e   :  { %1808 = vst.msk [vmem:[#allocation5 + $0x2c0] sm:$0xff] %vm457_vm3, %v1787_v32 }
 0x22f   :  { %1809 = vst.msk [vmem:[#allocation5 + $0x2c8] sm:$0xff] %vm457_vm3, %v1795_v60 }
 0x230   :  { %1810 = vst.msk [vmem:[#allocation5 + $0x2d0] sm:$0xff] %vm457_vm3, %v1788_v45 }
 0x231   :  { %1811 = vst.msk [vmem:[#allocation5 + $0x2d8] sm:$0xff] %vm457_vm3, %v1796_v63 }
 0x232   :  { %1812 = vst.msk [vmem:[#allocation5 + $0x2e0] sm:$0xff] %vm457_vm3, %v1789_v38 }
 0x233   :  { %1813 = vst.msk [vmem:[#allocation5 + $0x2e8] sm:$0xff] %vm457_vm3, %v1797_v11 }
 0x234   :  { %1814 = vst.msk [vmem:[#allocation5 + $0x2f0] sm:$0xff] %vm457_vm3, %v1790_v47 }
 0x235   :  { %1815 = vst.msk [vmem:[#allocation5 + $0x2f8] sm:$0xff] %vm457_vm3, %v1798_v19 }
 0x236   :  { %1828 = dma.vmem_to_hbm [thread:$0]  %s1821_s15, 12288, %s1823_s18, [#allocation4], %s1895_s11, %s1895_s11, %s1896_s12  }
 0x237   :  { %1892 = dma.done.wait [#allocation4], 12288  }
 0x238   :  { %1893 = vsyncadd [#allocation4], 4294955008 }
 0x239   :  { %1833 = vsyncpa [#allocation3], 1 }
 0x23a   :  { %1834 = vsyncpa [#allocation4], 1 }

</bundles_post_ra>
